<compile_context>
chip_gen: v7x
topology: tpu7x:2x2x1
jax: 0.10.0
libtpu: 0.0.40
codegen_flags: <defaults>
</compile_context>

<pallas_src>
import jax
import jax.numpy as jnp
from jax.experimental import pallas as pl
from jax.experimental.pallas import tpu as pltpu


def _round_up(a, b):
    return ((a + b - 1) // b) * b


# ----------------------------------------------------------------------------
# Fused forward
# ----------------------------------------------------------------------------
def fast_rcnn_comat_forward(x, Wc, bc, Wb, bb, Wce, bce, Wbe, bbe, adj, Wg, bg,
                            *, tile_n=128, compute_dtype=jnp.float32):
    if x.ndim > 2:
        x = x.reshape(x.shape[0], -1)
    N, D = x.shape
    Cp1 = Wc.shape[0]           # num_classes + 1
    B = Wb.shape[0]             # num_bbox_reg_classes * box_dim
    G = Wg.shape[0]             # graph_output_size (512)

    W_tot = 2 * (Cp1 + B)       # packed output width (72 for the example)
    P = _round_up(max(W_tot, 128), 128)   # lane-dense padded width
    f32 = jnp.float32

    # ---- fused / packed parameters (built once in the wrapper) ----
    # x-side: one (D, P) GEMM replaces four narrow matmuls.
    Wx = jnp.zeros((D, P), f32)
    Wx = Wx.at[:, 0:Cp1].set(Wc.T)
    Wx = Wx.at[:, Cp1:Cp1 + B].set(Wb.T)
    Wx = Wx.at[:, Cp1 + B:2 * Cp1 + B].set(Wce[:, G:].T)
    Wx = Wx.at[:, 2 * Cp1 + B:W_tot].set(Wbe[:, G:].T)

    bx = jnp.zeros((1, P), f32)
    bx = bx.at[0, 0:Cp1].set(bc)
    bx = bx.at[0, Cp1:Cp1 + B].set(bb)
    bx = bx.at[0, Cp1 + B:2 * Cp1 + B].set(bce)
    bx = bx.at[0, 2 * Cp1 + B:W_tot].set(bbe)

    # enc-side: only the *_enc columns are touched; the rest stays zero so
    # `base + enc @ Wenc` leaves scores / deltas untouched.
    Wenc = jnp.zeros((G, P), f32)
    Wenc = Wenc.at[:, Cp1 + B:2 * Cp1 + B].set(Wce[:, :G].T)
    Wenc = Wenc.at[:, 2 * Cp1 + B:W_tot].set(Wbe[:, :G].T)

    # graph branch parameters: W_classifier = [cls_score.weight | bias]
    Wcls_aug = jnp.concatenate([Wc, bc[:, None]], axis=1)   # (Cp1, D+1)
    WgT = Wg.T                                              # (D+1, G)
    bg2 = bg[None, :].astype(f32)                           # (1, G)

    # optional low-precision MXU inputs (f32 accumulation in-kernel)
    cdt = compute_dtype
    x_c = x.astype(cdt)
    Wx_c = Wx.astype(cdt)
    Wenc_c = Wenc.astype(cdt)
    adj_c = adj.astype(cdt)
    Wcls_c = Wcls_aug.astype(cdt)
    WgT_c = WgT.astype(cdt)

    # ---- row tiling / padding ----
    tile = max(8, min(tile_n, _round_up(N, 8)))
    Npad = _round_up(N, tile)
    if Npad != N:
        x_c = jnp.pad(x_c, ((0, Npad - N), (0, 0)))
    nsteps = Npad // tile

    # ---- kernel ----
    def kernel(x_ref, adj_ref, wcls_ref, wgt_ref, bg_ref,
               wx_ref, bx_ref, wenc_ref, out_ref):
        # graph branch: em_fc = relu(graph_fc(adj_gt @ W_classifier))
        # (tiny; recomputed every step so it is megacore-safe)
        em = jnp.dot(adj_ref[...], wcls_ref[...],
                     preferred_element_type=jnp.float32)
        em_fc = jnp.dot(em.astype(wgt_ref.dtype), wgt_ref[...],
                        preferred_element_type=jnp.float32) + bg_ref[...]
        em_fc = jnp.maximum(em_fc, 0.0)                      # (Cp1, G) f32

        xt = x_ref[...]                                      # (tile, D)
        # fused x-side GEMM -> packed [scores | deltas | x-part of *_enc]
        base = jnp.dot(xt, wx_ref[...],
                       preferred_element_type=jnp.float32) + bx_ref[...]

        # softmax over the class columns (detach is a forward no-op)
        scores = base[:, :Cp1]                               # (tile, Cp1)
        m = jnp.max(scores, axis=1, keepdims=True)
        e = jnp.exp(scores - m)
        ms = e * pl.reciprocal(jnp.sum(e, axis=1, keepdims=True), approx=True)

        # enc = softmax(scores) @ em_fc, then fused enc-side GEMM adds the
        # graph contribution to the *_enc columns only.
        enc = jnp.dot(ms.astype(xt.dtype), em_fc.astype(xt.dtype),
                      preferred_element_type=jnp.float32)    # (tile, G)
        out_ref[...] = base + jnp.dot(enc.astype(xt.dtype), wenc_ref[...],
                                      preferred_element_type=jnp.float32)

    full = lambda shape: pl.BlockSpec(shape, lambda i: (0, 0))
    row = lambda cols: pl.BlockSpec((tile, cols), lambda i: (i, 0))

    isz = jnp.dtype(cdt).itemsize
    cost = pl.CostEstimate(
        flops=2 * Npad * (D * P + Cp1 * G + G * P)
              + 2 * nsteps * Cp1 * (Cp1 * (D + 1) + (D + 1) * G),
        transcendentals=Npad * Cp1,
        bytes_accessed=(Npad * D + D * P + G * P + (D + 1) * G + Cp1 * Cp1
                        + Cp1 * (D + 1)) * isz + Npad * P * 4,
    )

    packed = pl.pallas_call(
        kernel,
        out_shape=jax.ShapeDtypeStruct((Npad, P), jnp.float32),
        grid=(nsteps,),
        in_specs=[row(D),                 # x
                  full((Cp1, Cp1)),       # adj_gt
                  full((Cp1, D + 1)),     # [W_cls | b_cls]
                  full((D + 1, G)),       # graph_fc.weight.T
                  full((1, G)),           # graph_fc.bias
                  full((D, P)),           # fused x-side weights
                  full((1, P)),           # fused biases
                  full((G, P))],          # fused enc-side weights
        out_specs=pl.BlockSpec((tile, P), lambda i: (i, 0)),
        compiler_params=pltpu.CompilerParams(
            dimension_semantics=("parallel",)),
        cost_estimate=cost,
    )(x_c, adj_c, Wcls_c, WgT_c, bg2, Wx_c, bx, Wenc_c)

    packed = packed[:N]
    scores = packed[:, 0:Cp1]
    deltas = packed[:, Cp1:Cp1 + B]
    scores_enc = packed[:, Cp1 + B:2 * Cp1 + B]
    deltas_enc = packed[:, 2 * Cp1 + B:W_tot]
    return scores, deltas, scores_enc, deltas_enc


# ----------------------------------------------------------------------------
# Pure-JAX reference (mirrors the PyTorch forward exactly)
# ----------------------------------------------------------------------------
def reference(x, Wc, bc, Wb, bb, Wce, bce, Wbe, bbe, adj, Wg, bg):
    if x.ndim > 2:
        x = x.reshape(x.shape[0], -1)
    scores = x @ Wc.T + bc
    deltas = x @ Wb.T + bb
    W_classifier = jnp.concatenate([Wc, bc[:, None]], axis=1)
    em = adj @ W_classifier
    em_fc = jnp.maximum(em @ Wg.T + bg, 0.0)
    Ms = jax.nn.softmax(scores, axis=1)
    enc = Ms @ em_fc
    enc_feat = jnp.concatenate([enc, x], axis=1)
    scores_enc = enc_feat @ Wce.T + bce
    deltas_enc = enc_feat @ Wbe.T + bbe
    return scores, deltas, scores_enc, deltas_enc


if __name__ == "__main__":
    # Shapes consistent with the module:
    #   feature map (N, C, H, W) = (512, 2, 4, 4) -> input_size D = 32
    #   num_classes = 7 (Cp1 = 8), box_dim = 4, class-specific bbox -> B = 28
    #   graph_output_size = 512.  N=512 with tile_n=128 gives a 4-step grid.
    N, C, H, W = 512, 2, 4, 4
    D = C * H * W
    num_classes = 7
    Cp1 = num_classes + 1
    box_dim = 4
    B = num_classes * box_dim           # cls_agnostic_bbox_reg = False
    G = 512

    key = jax.random.PRNGKey(0)
    ks = jax.random.split(key, 9)

    x = jax.random.normal(ks[0], (N, C, H, W), jnp.float32)

    Wc = 0.01 * jax.random.normal(ks[1], (Cp1, D), jnp.float32)           # cls_score.weight
    bc = jnp.zeros((Cp1,), jnp.float32)
    Wb = 0.001 * jax.random.normal(ks[2], (B, D), jnp.float32)            # bbox_pred.weight
    bb = jnp.zeros((B,), jnp.float32)
    Wce = 0.01 * jax.random.normal(ks[3], (Cp1, D + G), jnp.float32)      # cls_score_enc.weight
    bce = jnp.zeros((Cp1,), jnp.float32)
    Wbe = 0.001 * jax.random.normal(ks[4], (B, D + G), jnp.float32)       # bbox_pred_enc.weight
    bbe = jnp.zeros((B,), jnp.float32)
    adj = jax.random.uniform(ks[5], (Cp1, Cp1), jnp.float32)              # adj_gt
    Wg = jax.random.normal(ks[6], (G, D + 1), jnp.float32) / jnp.sqrt(D + 1.0)  # graph_fc.weight
    bg = 0.01 * jax.random.normal(ks[7], (G,), jnp.float32)               # graph_fc.bias

    outs = fast_rcnn_comat_forward(x, Wc, bc, Wb, bb, Wce, bce, Wbe, bbe,
                                   adj, Wg, bg, tile_n=128)
    outs = jax.block_until_ready(outs)

    refs = reference(x, Wc, bc, Wb, bb, Wce, bce, Wbe, bbe, adj, Wg, bg)
    for o, r in zip(outs, refs):
        assert o.shape == r.shape and o.dtype == r.dtype, (o.shape, r.shape)
        err = float(jnp.max(jnp.abs(o - r)))
        assert jnp.allclose(o, r, rtol=1e-3, atol=1e-3), err

    print("KERNEL_OK")
</pallas_src>

<mosaic_0001>
module attributes {stable_mosaic.version = 11 : i64} {
  func.func @kernel(%arg0: i32, %arg1: memref<128x32xf32, #tpu.memory_space<vmem>>, %arg2: memref<8x8xf32, #tpu.memory_space<vmem>>, %arg3: memref<8x33xf32, #tpu.memory_space<vmem>>, %arg4: memref<33x512xf32, #tpu.memory_space<vmem>>, %arg5: memref<1x512xf32, #tpu.memory_space<vmem>>, %arg6: memref<32x128xf32, #tpu.memory_space<vmem>>, %arg7: memref<1x128xf32, #tpu.memory_space<vmem>>, %arg8: memref<512x128xf32, #tpu.memory_space<vmem>>, %arg9: memref<128x128xf32, #tpu.memory_space<vmem>>) attributes {dimension_semantics = [#tpu.dimension_semantics<parallel>], iteration_bounds = array<i64: 4>, scalar_prefetch = 0 : i64, scratch_operands = 0 : i64, tpu.core_type = #tpu.core_type<tc>, window_params = [{transform_indices = @transform_0, window_bounds = array<i64: 128, 32>}, {pipeline_mode = #tpu.pipeline_mode<synchronous>, transform_indices = @transform_1, window_bounds = array<i64: 8, 8>}, {pipeline_mode = #tpu.pipeline_mode<synchronous>, transform_indices = @transform_2, window_bounds = array<i64: 8, 33>}, {pipeline_mode = #tpu.pipeline_mode<synchronous>, transform_indices = @transform_3, window_bounds = array<i64: 33, 512>}, {pipeline_mode = #tpu.pipeline_mode<synchronous>, transform_indices = @transform_4, window_bounds = array<i64: 1, 512>}, {pipeline_mode = #tpu.pipeline_mode<synchronous>, transform_indices = @transform_5, window_bounds = array<i64: 32, 128>}, {pipeline_mode = #tpu.pipeline_mode<synchronous>, transform_indices = @transform_6, window_bounds = array<i64: 1, 128>}, {pipeline_mode = #tpu.pipeline_mode<synchronous>, transform_indices = @transform_7, window_bounds = array<i64: 512, 128>}, {transform_indices = @transform_8, window_bounds = array<i64: 128, 128>}]} {
    %c0 = arith.constant 0 : index
    %c0_0 = arith.constant 0 : index
    %0 = vector.load %arg2[%c0, %c0_0] : memref<8x8xf32, #tpu.memory_space<vmem>>, vector<8x8xf32>
    %c0_1 = arith.constant 0 : index
    %c0_2 = arith.constant 0 : index
    %1 = vector.load %arg3[%c0_1, %c0_2] : memref<8x33xf32, #tpu.memory_space<vmem>>, vector<8x33xf32>
    %cst = arith.constant dense<0.000000e+00> : vector<8x33xf32>
    %2 = tpu.matmul %0, %1, %cst {dimension_numbers = #tpu.dot_dimension_numbers<[1], [0], [0], [1], [0, 0, 1, 1], [], []>} : vector<8x8xf32>, vector<8x33xf32>, vector<8x33xf32> -> vector<8x33xf32>
    %c0_3 = arith.constant 0 : index
    %c0_4 = arith.constant 0 : index
    %3 = vector.load %arg4[%c0_3, %c0_4] : memref<33x512xf32, #tpu.memory_space<vmem>>, vector<33x512xf32>
    %cst_5 = arith.constant dense<0.000000e+00> : vector<8x512xf32>
    %4 = tpu.matmul %2, %3, %cst_5 {dimension_numbers = #tpu.dot_dimension_numbers<[1], [0], [0], [1], [0, 0, 1, 1], [], []>} : vector<8x33xf32>, vector<33x512xf32>, vector<8x512xf32> -> vector<8x512xf32>
    %c0_6 = arith.constant 0 : index
    %c0_7 = arith.constant 0 : index
    %5 = vector.load %arg5[%c0_6, %c0_7] : memref<1x512xf32, #tpu.memory_space<vmem>>, vector<1x512xf32>
    %6 = vector.broadcast %5 : vector<1x512xf32> to vector<8x512xf32>
    %7 = arith.addf %4, %6 : vector<8x512xf32>
    %cst_8 = arith.constant 0.000000e+00 : f32
    %8 = vector.broadcast %cst_8 : f32 to vector<8x512xf32>
    %9 = arith.maximumf %7, %8 : vector<8x512xf32>
    %c0_9 = arith.constant 0 : index
    %c0_10 = arith.constant 0 : index
    %10 = vector.load %arg1[%c0_9, %c0_10] : memref<128x32xf32, #tpu.memory_space<vmem>>, vector<128x32xf32>
    %c0_11 = arith.constant 0 : index
    %c0_12 = arith.constant 0 : index
    %11 = vector.load %arg6[%c0_11, %c0_12] : memref<32x128xf32, #tpu.memory_space<vmem>>, vector<32x128xf32>
    %cst_13 = arith.constant dense<0.000000e+00> : vector<128x128xf32>
    %12 = tpu.matmul %10, %11, %cst_13 {dimension_numbers = #tpu.dot_dimension_numbers<[1], [0], [0], [1], [0, 0, 1, 1], [], []>} : vector<128x32xf32>, vector<32x128xf32>, vector<128x128xf32> -> vector<128x128xf32>
    %c0_14 = arith.constant 0 : index
    %c0_15 = arith.constant 0 : index
    %13 = vector.load %arg7[%c0_14, %c0_15] : memref<1x128xf32, #tpu.memory_space<vmem>>, vector<1x128xf32>
    %14 = vector.broadcast %13 : vector<1x128xf32> to vector<128x128xf32>
    %15 = arith.addf %12, %14 : vector<128x128xf32>
    %16 = vector.extract_strided_slice %15 {offsets = [0, 0], sizes = [128, 8], strides = [1, 1]} : vector<128x128xf32> to vector<128x8xf32>
    %cst_16 = arith.constant dense<0xFF800000> : vector<128xf32>
    %17 = vector.multi_reduction <maximumf>, %16, %cst_16 [1] : vector<128x8xf32> to vector<128xf32>
    %18 = vector.shape_cast %17 : vector<128xf32> to vector<128x1xf32>
    %19 = vector.broadcast %18 : vector<128x1xf32> to vector<128x8xf32>
    %20 = arith.subf %16, %19 : vector<128x8xf32>
    %21 = math.exp %20 : vector<128x8xf32>
    %cst_17 = arith.constant dense<0.000000e+00> : vector<128xf32>
    %22 = vector.multi_reduction <add>, %21, %cst_17 [1] : vector<128x8xf32> to vector<128xf32>
    %23 = vector.shape_cast %22 : vector<128xf32> to vector<128x1xf32>
    %24 = tpu.reciprocal %23 {approx = true} : vector<128x1xf32> -> vector<128x1xf32>
    %25 = vector.broadcast %24 : vector<128x1xf32> to vector<128x8xf32>
    %26 = arith.mulf %21, %25 : vector<128x8xf32>
    %cst_18 = arith.constant dense<0.000000e+00> : vector<128x512xf32>
    %27 = tpu.matmul %26, %9, %cst_18 {dimension_numbers = #tpu.dot_dimension_numbers<[1], [0], [0], [1], [0, 0, 1, 1], [], []>} : vector<128x8xf32>, vector<8x512xf32>, vector<128x512xf32> -> vector<128x512xf32>
    %c0_19 = arith.constant 0 : index
    %c0_20 = arith.constant 0 : index
    %28 = vector.load %arg8[%c0_19, %c0_20] : memref<512x128xf32, #tpu.memory_space<vmem>>, vector<512x128xf32>
    %cst_21 = arith.constant dense<0.000000e+00> : vector<128x128xf32>
    %29 = tpu.matmul %27, %28, %cst_21 {dimension_numbers = #tpu.dot_dimension_numbers<[1], [0], [0], [1], [0, 0, 1, 1], [], []>} : vector<128x512xf32>, vector<512x128xf32>, vector<128x128xf32> -> vector<128x128xf32>
    %30 = arith.addf %15, %29 : vector<128x128xf32>
    %c0_22 = arith.constant 0 : index
    %c0_23 = arith.constant 0 : index
    %31 = vector.load %arg9[%c0_22, %c0_23] : memref<128x128xf32, #tpu.memory_space<vmem>>, vector<128x128xf32>
    tpu.vector_store %arg9[%c0_22, %c0_23], %30 {strides = array<i32>} : memref<128x128xf32, #tpu.memory_space<vmem>>, vector<128x128xf32>,
    return
  }
  func.func @transform_0(%arg0: i32) -> (i32, i32) {
    %c0_i32 = arith.constant 0 : i32
    %c0_i32_0 = arith.constant 0 : i32
    return %arg0, %c0_i32 : i32, i32
  }
  func.func @transform_1(%arg0: i32) -> (i32, i32) {
    %c0_i32 = arith.constant 0 : i32
    %c0_i32_0 = arith.constant 0 : i32
    %c0_i32_1 = arith.constant 0 : i32
    return %c0_i32, %c0_i32_0 : i32, i32
  }
  func.func @transform_2(%arg0: i32) -> (i32, i32) {
    %c0_i32 = arith.constant 0 : i32
    %c0_i32_0 = arith.constant 0 : i32
    %c0_i32_1 = arith.constant 0 : i32
    return %c0_i32, %c0_i32_0 : i32, i32
  }
  func.func @transform_3(%arg0: i32) -> (i32, i32) {
    %c0_i32 = arith.constant 0 : i32
    %c0_i32_0 = arith.constant 0 : i32
    %c0_i32_1 = arith.constant 0 : i32
    return %c0_i32, %c0_i32_0 : i32, i32
  }
  func.func @transform_4(%arg0: i32) -> (i32, i32) {
    %c0_i32 = arith.constant 0 : i32
    %c0_i32_0 = arith.constant 0 : i32
    %c0_i32_1 = arith.constant 0 : i32
    return %c0_i32, %c0_i32_0 : i32, i32
  }
  func.func @transform_5(%arg0: i32) -> (i32, i32) {
    %c0_i32 = arith.constant 0 : i32
    %c0_i32_0 = arith.constant 0 : i32
    %c0_i32_1 = arith.constant 0 : i32
    return %c0_i32, %c0_i32_0 : i32, i32
  }
  func.func @transform_6(%arg0: i32) -> (i32, i32) {
    %c0_i32 = arith.constant 0 : i32
    %c0_i32_0 = arith.constant 0 : i32
    %c0_i32_1 = arith.constant 0 : i32
    return %c0_i32, %c0_i32_0 : i32, i32
  }
  func.func @transform_7(%arg0: i32) -> (i32, i32) {
    %c0_i32 = arith.constant 0 : i32
    %c0_i32_0 = arith.constant 0 : i32
    %c0_i32_1 = arith.constant 0 : i32
    return %c0_i32, %c0_i32_0 : i32, i32
  }
  func.func @transform_8(%arg0: i32) -> (i32, i32) {
    %c0_i32 = arith.constant 0 : i32
    %c0_i32_0 = arith.constant 0 : i32
    return %arg0, %c0_i32 : i32, i32
  }
}

</mosaic_0001>

<bundles_post_ra>
// kernel: tpu_custom_call.1
= control target key start
LH: loop header
LB: loop body
LE: loop exit
PB: predicated region body
PF: predicated region fallthrough
CT: control target
= control target key end

     0   :  { %13 = vsyncpa [#allocation3], 0  ;;  %s3262_s0 = inlined_call_operand.vmem [shape: f32[512,32], index: 0, kind: input, shape index: {}]   ;;  %s3263_s1 = inlined_call_operand.vmem [shape: f32[8,8], index: 1, kind: input, shape index: {}]   ;;  %s3264_s2 = inlined_call_operand.vmem [shape: f32[8,33], index: 2, kind: input, shape index: {}]   ;;  %s3265_s3 = inlined_call_operand.hbm [shape: f32[33,512], index: 3, kind: input, shape index: {}]   ;;  %s3266_s4 = inlined_call_operand.vmem [shape: f32[1,512], index: 4, kind: input, shape index: {}]   ;;  %s3267_s5 = inlined_call_operand.vmem [shape: f32[32,128], index: 5, kind: input, shape index: {}]   ;;  %s3268_s6 = inlined_call_operand.vmem [shape: f32[1,128], index: 6, kind: input, shape index: {}]   ;;  %s3269_s7 = inlined_call_operand.vmem [shape: f32[512,128], index: 7, kind: input, shape index: {}]   ;;  %s3270_s8 = inlined_call_operand.hbm [shape: f32[512,128], index: 8, kind: output, shape index: {}]  }
   0x1   :  { %14 = vsyncpa [#allocation4], 0 }
   0x2   :  { %16 = vsyncpa [#allocation4 + $0x1], 0  ;;  %s2507_s27 = smov 0   ;;  %s2509_s28 = smov 0  }
   0x3   :  { %s2511_s29 = smov 0   ;;  %s2513_s30 = smov 0  }
   0x4 LB: > { %s2528_s9 = sadd.s32 4294967295, %s2452_s30   ;;  %s1844_s10 = sadd.s32 4294967294, %s2452_s30   ;;  %s2452_s30 = sphi %s2513_s30, %s3286_s30   ;;  %s2448_s29 = sphi %s2511_s29, %s3285_s29   ;;  %s2444_s28 = sphi %s2509_s28, %s3284_s28   ;;  %s2440_s27 = sphi %s2507_s27, %s3283_s27  }
   0x5   : > { %s2532_s11 = sadd.s32 1, %s2452_s30   ;;  %s202_s12 = sadd.s32 1, %s2448_s29 }
   0x6   : > { %s199_s13 = ssub.s32 %s2452_s30, %s2532_s11  ;;  %p212_p0 = scmp.ne.s32.totalorder %s2448_s29, %s2444_s28 }
   0x7   : > { %p200_p1 = scmp.eq.s32.totalorder %s199_s13, 0  ;;  %p213_p2 = scmp.eq.s32.totalorder %s2528_s9, 3 }
   0x8   : > { %p218_p3 = scmp.ne.s32.totalorder %s2444_s28, %s2440_s27  ;;  %p219_p4 = scmp.eq.s32.totalorder %s1844_s10, 3 }
   0x9   : > { %s2543_s14 = scalar_select %p200_p1, %s2448_s29, %s202_s12  }
   0xa   : > { %p2545_p5 = por %p213_p2, %p212_p0  ;;  %p2549_p6 = por %p219_p4, %p218_p3 }
   0xb   : > { %p1845_p7 = scmp.ge.s32.totalorder %s2452_s30, 1  ;;  %p226_p8 = scmp.lt.s32.totalorder %s2452_s30, 5 }
   0xc   : > { %s3274_s15 = scalar_select %p2545_p5, 1, 0 }
   0xd   : > { %s3275_s16 = scalar_select %p2549_p6, 1, 0 }
   0xe   : > { %p3271_p9 = scmp.eq.s32.totalorder %s2528_s9, 0  ;;  %p2556_p10 = pnand %p1845_p7, %p226_p8 }
   0xf   : > { %s2454_s18 = smov [#allocation2]   ;;  %s2358_s23 = scalar_lea.hbm %s3265_s3, 2560 }
  0x10   : > { %s3276_s17 = scalar_select %p2556_p10, 1, 0 }
  0x11   : > { %s244_s19 = sshll.u32 %s2454_s18, 4  ;;  %p2244_p11 = pneg %p2556_p10  ;;  %s245_s19 = int_to_ptr.vmem [resolvable:$true] %s244_s19 }
  0x12   : > { %p2359_p13 = scmp.ne.s32.totalorder %s3265_s3, %s2358_s23  ;;  %p2365_p3 = scmp.lt.u32.totalorder %s2358_s23, %s3265_s3 }
  0x13   : > { %p2564_p12 = pnand %p3271_p9, %p2244_p11 }
  0x15   : > { %p2360_p0 = pneg %p2564_p12 }
  0x17   : > { %p2361_p1 = pnand %p2360_p0, %p2359_p13 }
  0x19   : > { %p2362_p2 = pneg %p2361_p1 }
  0x1b   : > { %p2367_p4 = pnand %p2365_p3, %p2362_p2 }
  0x1d   : > { %2370 = shalt.err (!%p2367_p4)
}
  0x1e   : > { %s2371_s12 = scalar_lea.vmem %s245_s19, 2560  ;;  %p2379_p9 = scmp.lt.s32.totalorder %s245_s19, %s245_s19 }
  0x1f   : > { %p2372_p7 = scmp.ne.s32.totalorder %s245_s19, %s2371_s12  ;;  %p2380_p6 = scmp.lt.s32.totalorder %s2371_s12, %s2371_s12 }
  0x21   : > { %p2374_p8 = pnand %p2372_p7, %p2360_p0  ;;  %p2381_p5 = por %p2380_p6, %p2379_p9 }
  0x23   : > { %p2375_p11 = pneg %p2374_p8 }
  0x25   : > { %p2382_p10 = pnand %p2381_p5, %p2375_p11 }
  0x27   : > { %2385 = shalt.err (!%p2382_p10)
}
  0x28   : > { %s2455_s13 = smov 512   ;;  %s2456_s18 = smov 32  }
  0x29   : > { %2247 = dma.hbm_to_vmem [thread:$0]  (!%p2564_p12), %s3265_s3, 2560, %s245_s19, [#allocation3], %s2455_s13, %s2455_s13, %s2456_s18  }
  0x2a   : > { %p3278_p13 = scmp.ne.s32.totalorder %s3276_s17, 0 }
  0x2b   : > { %p3279_p1 = scmp.eq.s32.totalorder (!%p3278_p13), %s2528_s9, 0 }
  0x2c   : > { %281 = sbr.rel (%p3278_p13) target bundleno = 1329 (0x531), region = 52 }
  0x33   : > { %2431 = dma.done.wait (%p3279_p1), [#allocation3], 2560   ;;  %p3280_p0 = pmov %p3279_p1 }
  0x34   : > { %v2457_v0 = vmov 0.0   ;;  %vm2458_vm0 = vmmov 0   ;;  %vm324_vm1 = vcmask 64512   ;;  %v323_v1 = vld [vmem:[%s3264_s2] sm:$0xff]  ;;  %v399_v3 = vld [vmem:[#allocation2 + $0x8] sm:$0xff]  ;;  %v401_v9 = vld [vmem:[#allocation2 + $0x18] sm:$0xff]  ;;  %v420_v55 = vlaneseq }
  0x35   : > { %2433 = vsyncadd (%p3280_p0), [#allocation3], 4294964736  ;;  %2097 = vmatprep.subr.mxu0 %v2457_v0  ;;  %2099 = vmatprep.mubr.msk.f32.mxu0 %vm2458_vm0, %v2457_v0  ;;  %v322_v2 = vld [vmem:[%s3263_s1] sm:$0xff]  ;;  %v403_v4 = vld [vmem:[#allocation2 + $0x28] sm:$0xff]  ;;  %vm444_vm2 = vcmask 1040384   ;;  %s1851_s12 = sshll.u32 %s2528_s9, 4 }
  0x36   : > { %521 = vmatprep.mubr.f32.mxu1 %v2457_v0  ;;  %2098 = vmatpush3.msra.mxu0 %v323_v1  ;;  %v398_v5 = vld [vmem:[#allocation2] sm:$0xff]  ;;  %v2134_v7 = vpack.c.bf16 %v403_v4, %v399_v3  ;;  %v405_v10 = vld [vmem:[#allocation2 + $0x38] sm:$0xff]  ;;  %v400_v11 = vld [vmem:[#allocation2 + $0x10] sm:$0xff]  ;;  %p316_p5 = scmp.lt.s32.totalorder %s1851_s12, 63  ;;  %vm440_vm3 = vcmask 269312   ;;  %vm630_vm4 = vcmask 261120  }
  0x37   : > { %v402_v6 = vld [vmem:[#allocation2 + $0x20] sm:$0xff]  ;;  %2100 = vmatmul.mubr.msk.f32.vlgmr.msra.gmra.mrb[0].mxu0 %vm324_vm1, %v322_v2  ;;  %v2142_v12 = vpack.c.bf16 %v405_v10, %v401_v9  ;;  %v404_v13 = vld [vmem:[#allocation2 + $0x30] sm:$0xff]  ;;  %v407_v14 = vld [vmem:[#allocation2 + $0x48] sm:$0xff]  ;;  %v421_v56 = vshrl.u32 %v420_v55, 7  ;;  %s312_s26 = sand.u32 1, %s2444_s28   ;;  %p3281_p9 = scmp.ne.s32.totalorder %s3274_s15, 0 }
  0x38   : > { %v2136_v8 = vpack.c.bf16 %v402_v6, %v398_v5  ;;  %v411_v15 = vld [vmem:[#allocation2 + $0x68] sm:$0xff]  ;;  %592 = vmatprep.mubr.f32.mxu0 %v2457_v0  ;;  %2135 = vmatprep.subr.bf16.mxu1 %v2134_v7  ;;  %v2144_v16 = vpack.c.bf16 %v404_v13, %v400_v11  ;;  %v406_v18 = vld [vmem:[#allocation2 + $0x40] sm:$0xff]  ;;  %v409_v20 = vld [vmem:[#allocation2 + $0x58] sm:$0xff]  ;;  %s3288_s12 = smov (!%p316_p5, %s1851_s12), 63  ;;  %s1850_s10 = sshll.u32 %s312_s26, 7 }
  0x39   : > { %v2138_v17 = vpack.c.bf16 %v411_v15, %v407_v14  ;;  %v410_v19 = vld [vmem:[#allocation2 + $0x60] sm:$0xff]  ;;  %2143 = vmatprep.subr.bf16.mxu0 %v2142_v12  ;;  %v413_v22 = vld [vmem:[#allocation2 + $0x78] sm:$0xff]  ;;  %v408_v23 = vld [vmem:[#allocation2 + $0x50] sm:$0xff]  ;;  %s1852_s13 = sshll.u32 %s3288_s12, 3  ;;  %v422_v57 = vsub.s32 0, %v421_v56  ;;  %v430_v58 = vsub.s32 2, %v421_v56 }
  0x3a   : > { %2137 = vmatpush1.bf16.msra.mxu1 %v2136_v8  ;;  %v2140_v21 = vpack.c.bf16 %v410_v19, %v406_v18  ;;  %v412_v24 = vld [vmem:[#allocation2 + $0x70] sm:$0xff]  ;;  %2145 = vmatpush1.bf16.msra.mxu0 %v2144_v16  ;;  %v2146_v25 = vpack.c.bf16 %v413_v22, %v409_v20  ;;  %v415_v27 = vld [vmem:[#allocation2 + $0x88] sm:$0x1]  ;;  %v417_v28 = vld [vmem:[#allocation2 + $0x98] sm:$0x1]  ;;  %s2617_s23 = scalar_lea.vmem %s3262_s0, %s1852_s13  ;;  %v426_v60 = vsub.s32 1, %v421_v56 }
  0x3b   : > { %2139 = vmatprep.subr.bf16.mxu1 %v2138_v17  ;;  %v2148_v26 = vpack.c.bf16 %v412_v24, %v408_v23  ;;  %v414_v29 = vld [vmem:[#allocation2 + $0x80] sm:$0x1]  ;;  %v620_v31 = vld [vmem:[%s3267_s5 + $0x8] sm:$0xff]  ;;  %v416_v33 = vld [vmem:[#allocation2 + $0x90] sm:$0x1]  ;;  %v434_v61 = vsub.s32 3, %v421_v56 }
  0x3c   : > { %2147 = vmatprep.subr.bf16.mxu0 %v2146_v25  ;;  %v619_v30 = vld [vmem:[%s3267_s5] sm:$0xff]  ;;  %v621_v34 = vld [vmem:[%s3267_s5 + $0x10] sm:$0xff]  ;;  %v622_v35 = vld [vmem:[%s3267_s5 + $0x18] sm:$0xff]  ;;  %s3173_s12 = scalar_lea.vmem [#allocation5], %s1850_s10  ;;  %s1914_s13 = sshll.u32 %s2528_s9, 11 }
  0x3d   : > { %v2150_v32 = vpack.c.bf16 %v620_v31, %v619_v30  ;;  %v2154_v36 = vpack.c.bf16 %v622_v35, %v621_v34  ;;  %v603_v37 = vld [vmem:[%s2617_s23] sm:$0xff]  ;;  %v604_v40 = vld [vmem:[%s2617_s23 + $0x8] sm:$0xff]  ;;  %v605_v41 = vld [vmem:[%s2617_s23 + $0x10] sm:$0xff]  ;;  %s1770_s18 = sshll.u32 %s3173_s12, 4  ;;  %s3213_s20 = scalar_lea.hbm %s3270_s8, %s1914_s13  ;;  %s3215_s18 = int_to_ptr.vmem [resolvable:$true] %s1770_s18 }
  0x3e   : > { %2141 = vmatpush1.bf16.msra.mxu1 %v2140_v21  ;;  %2149 = vmatpush1.bf16.msra.mxu0 %v2148_v26  ;;  %v606_v42 = vld [vmem:[%s2617_s23 + $0x18] sm:$0xff]  ;;  %v607_v43 = vld [vmem:[%s2617_s23 + $0x20] sm:$0xff]  ;;  %v608_v44 = vld [vmem:[%s2617_s23 + $0x28] sm:$0xff]  ;;  %s3221_s19 = scalar_lea.sflag [#allocation4], %s312_s26  ;;  %s2386_s9 = scalar_lea.vmem %s3215_s18, 2048 }
  0x3f   : > { %1854 = vmatprep.subr.msk.mxu1 %vm444_vm2, %v415_v27  ;;  %1857 = vmatprep.subr.msk.mxu0 %vm444_vm2, %v417_v28  ;;  %v609_v45 = vld [vmem:[%s2617_s23 + $0x30] sm:$0xff]  ;;  %v610_v46 = vld [vmem:[%s2617_s23 + $0x38] sm:$0xff]  ;;  %v611_v47 = vld [vmem:[%s2617_s23 + $0x40] sm:$0xff]  ;;  %p2387_p6 = scmp.ne.s32.totalorder %s3215_s18, %s2386_s9  ;;  %s2459_s17 = smov [#allocation5]  }
  0x40   : > { %v612_v48 = vld [vmem:[%s2617_s23 + $0x48] sm:$0xff]  ;;  %v613_v49 = vld [vmem:[%s2617_s23 + $0x50] sm:$0xff]  ;;  %v614_v50 = vld [vmem:[%s2617_s23 + $0x58] sm:$0xff] }
  0x41   : > { %v615_v51 = vld [vmem:[%s2617_s23 + $0x60] sm:$0xff]  ;;  %v616_v52 = vld [vmem:[%s2617_s23 + $0x68] sm:$0xff]  ;;  %v617_v53 = vld [vmem:[%s2617_s23 + $0x70] sm:$0xff]  ;;  %p2388_p10 = pnand %p2387_p6, %p3281_p9 }
  0x42   : > { %1855 = vmatpush1.msk.msra.mxu1 %vm444_vm2, %v414_v29  ;;  %1858 = vmatpush1.msk.msra.mxu0 %vm444_vm2, %v416_v33  ;;  %v618_v54 = vld [vmem:[%s2617_s23 + $0x78] sm:$0xff]  ;;  %v418_v59 = vld [vmem:[%s3266_s4] sm:$0xf]  ;;  %s2390_s23 = sshll.u32 %s2459_s17, 4  ;;  %s2391_s23 = int_to_ptr.vmem [resolvable:$false] %s2390_s23 }
  0x43   : > { %2151 = vmatprep.subr.bf16.mxu1 %v2150_v32  ;;  %v423_v62 = vrot.slane %v418_v59, %v422_v57  ;;  %v431_v63 = vrot.slane %v418_v59, %v430_v58  ;;  %v427_v1 = vrot.slane %v418_v59, %v426_v60  ;;  %v435_v2 = vrot.slane %v418_v59, %v434_v61  ;;  %v1860_v15 = vld [vmem:[%s3268_s6] ss:$0 sm:$0xff]  ;;  %p2389_p12 = pneg %p2388_p10  ;;  %s2392_s24 = scalar_lea.vmem %s2391_s23, 4096 }
  0x44   : > { %p2393_p2 = scmp.lt.s32.totalorder %s3215_s18, %s2391_s23  ;;  %p2394_p3 = scmp.lt.s32.totalorder %s2392_s24, %s2386_s9 }
  0x46   : > { %p2395_p4 = por %p2394_p3, %p2393_p2 }
  0x48   : > { %p2396_p7 = pnand %p2395_p4, %p2389_p12 }
 0x10a   : > { %v394_v38 = vpop.f32.mrb[0].mxu0 }
 0x10b   : > { %v2101_v39 = vpop.f32.mrb[1].mxu0  ;;  %1856 = vmatmul.mubr.msk.f32.vlgmr.msra.gmra.mrb[0].mxu1 %vm440_vm3, %v394_v38  ;;  %1859 = vmatmul.mubr.msk.f32.vlgmr.msra.gmra.mrb[2].mxu0 %vm440_vm3, %v394_v38 }
 0x10c   : > { %2153 = vmatpush3.bf16.msra.mxu1 %v2150_v32  ;;  %2110 = vmatprep.mubr.msk.f32.mxu1 %vm630_vm4, %v603_v37 }
 0x10d   : > { %2155 = vmatprep.subr.bf16.mxu1 %v2154_v36  ;;  %1112 = vmatprep.mubr.f32.mxu0 %v2457_v0 }
 0x110   : > { %2157 = vmatpush3.bf16.msra.mxu1 %v2154_v36 }
 0x113   : > { %2111 = vmatmul.mubr.msk.f32.vlgmr.msra.gmra.mrb[2].mxu1 %vm630_vm4, %v604_v40 }
 0x114   : > { %2113 = vmatprep.mubr.msk.f32.mxu1 %vm630_vm4, %v605_v41 }
 0x117   : > { %2114 = vmatmul.mubr.msk.f32.gmra.mrb[4].mxu1 %vm630_vm4, %v606_v42 }
 0x118   : > { %2116 = vmatprep.mubr.msk.f32.mxu1 %vm630_vm4, %v607_v43 }
 0x11b   : > { %2117 = vmatmul.mubr.msk.f32.gmra.mrb[6].mxu1 %vm630_vm4, %v608_v44 }
 0x11c   : > { %2119 = vmatprep.mubr.msk.f32.mxu1 %vm630_vm4, %v609_v45 }
 0x11f   : > { %2120 = vmatmul.mubr.msk.f32.gmra.mrb[8].mxu1 %vm630_vm4, %v610_v46 }
 0x120   : > { %2122 = vmatprep.mubr.msk.f32.mxu1 %vm630_vm4, %v611_v47 }
 0x123   : > { %2123 = vmatmul.mubr.msk.f32.gmra.mrb[10].mxu1 %vm630_vm4, %v612_v48 }
 0x124   : > { %2125 = vmatprep.mubr.msk.f32.mxu1 %vm630_vm4, %v613_v49 }
 0x127   : > { %2126 = vmatmul.mubr.msk.f32.gmra.mrb[12].mxu1 %vm630_vm4, %v614_v50 }
 0x128   : > { %2128 = vmatprep.mubr.msk.f32.mxu1 %vm630_vm4, %v615_v51 }
 0x12b   : > { %2129 = vmatmul.mubr.msk.f32.gmra.mrb[14].mxu1 %vm630_vm4, %v616_v52 }
 0x12c   : > { %2131 = vmatprep.mubr.msk.f32.mxu1 %vm630_vm4, %v617_v53 }
 0x12f   : > { %2132 = vmatmul.mubr.msk.f32.gmra.mrb[16].mxu1 %vm630_vm4, %v618_v54 }
 0x130   : > { %1273 = vmatprep.mubr.f32.mxu1 %v2457_v0 }
 0x1de   : > { %v523_v3 = vpop.f32.mrb[0].mxu1  ;;  %v594_v4 = vpop.f32.mrb[2].mxu0 }
 0x1df   : > { %v524_v5 = vadd.f32 %v523_v3, %v423_v62  ;;  %v595_v6 = vadd.f32 %v594_v4, %v431_v63  ;;  %v525_v7 = vpop.f32.mrb[1].mxu1  ;;  %v596_v8 = vpop.f32.mrb[3].mxu0 }
 0x1e0   : > { %v526_v9 = vadd.f32 %v525_v7, %v427_v1  ;;  %v597_v10 = vadd.f32 %v596_v8, %v435_v2 }
 0x1e1   : > { %v599_v13 = vmax.f32 %v524_v5, 0.0  ;;  %v601_v14 = vmax.f32 %v595_v6, 0.0 }
 0x1e2   : > { %v600_v11 = vmax.f32 %v526_v9, 0.0  ;;  %v602_v12 = vmax.f32 %v597_v10, 0.0 }
 0x1e4   : > { %1048 = vmatprep.subr.mxu0 %v600_v11  ;;  %1209 = vmatprep.subr.mxu1 %v602_v12 }
 0x1e5   : > { %1049 = vmatpush1.msra.mxu0 %v599_v13  ;;  %1210 = vmatpush1.msra.mxu1 %v601_v14 }
 0x1e6   : > { %v2112_v16 = vpop.f32.mrb[2].mxu1 }
 0x1e7   : > { %v745_v17 = vpop.f32.mrb[3].mxu1  ;;  %v2661_v19 = vadd.f32 %v2112_v16, %v1860_v15 }
 0x1e8   : > { %v2659_v18 = vadd.f32 %v1860_v15, %v745_v17 }
 0x1e9   : > { %v827_v27 = vsel %vm324_vm1, %v2661_v19, -inf }
 0x1ea   : > { %v2115_v20 = vpop.f32.mrb[4].mxu1  ;;  %v824_v21 = vsel %vm324_vm1, %v2659_v18, -inf }
 0x1eb   : > { %v755_v22 = vpop.f32.mrb[5].mxu1  ;;  %825 = vmax.xlane.f32.xlu0 %v824_v21  ;;  %v2665_v23 = vadd.f32 %v2115_v20, %v1860_v15 }
 0x1ec   : > { %v2667_v24 = vadd.f32 %v1860_v15, %v755_v22 }
 0x1ed   : > { %v833_v31 = vsel %vm324_vm1, %v2665_v23, -inf }
 0x1ee   : > { %v2118_v25 = vpop.f32.mrb[6].mxu1  ;;  %v830_v26 = vsel %vm324_vm1, %v2667_v24, -inf }
 0x1ef   : > { %v765_v28 = vpop.f32.mrb[7].mxu1  ;;  %831 = vmax.xlane.f32.xlu1 %v830_v26  ;;  %828 = vmax.xlane.f32.xlu0 %v827_v27  ;;  %v2673_v29 = vadd.f32 %v2118_v25, %v1860_v15 }
 0x1f0   : > { %v2675_v30 = vadd.f32 %v1860_v15, %v765_v28 }
 0x1f1   : > { %v839_v37 = vsel %vm324_vm1, %v2673_v29, -inf }
 0x1f2   : > { %v2121_v32 = vpop.f32.mrb[8].mxu1  ;;  %v836_v33 = vsel %vm324_vm1, %v2675_v30, -inf }
 0x1f3   : > { %v775_v34 = vpop.f32.mrb[9].mxu1  ;;  %834 = vmax.xlane.f32.xlu1 %v833_v31  ;;  %837 = vmax.xlane.f32.xlu0 %v836_v33  ;;  %v2681_v35 = vadd.f32 %v2121_v32, %v1860_v15 }
 0x1f4   : > { %v2683_v36 = vadd.f32 %v1860_v15, %v775_v34 }
 0x1f5   : > { %v845_v43 = vsel %vm324_vm1, %v2681_v35, -inf }
 0x1f6   : > { %v2124_v38 = vpop.f32.mrb[10].mxu1  ;;  %v842_v39 = vsel %vm324_vm1, %v2683_v36, -inf }
 0x1f7   : > { %v785_v40 = vpop.f32.mrb[11].mxu1  ;;  %840 = vmax.xlane.f32.xlu1 %v839_v37  ;;  %843 = vmax.xlane.f32.xlu0 %v842_v39  ;;  %v2689_v41 = vadd.f32 %v2124_v38, %v1860_v15 }
 0x1f8   : > { %v2691_v42 = vadd.f32 %v1860_v15, %v785_v40 }
 0x1f9   : > { %v851_v49 = vsel %vm324_vm1, %v2689_v41, -inf }
 0x1fa   : > { %v2127_v44 = vpop.f32.mrb[12].mxu1  ;;  %v848_v45 = vsel %vm324_vm1, %v2691_v42, -inf }
 0x1fb   : > { %v795_v46 = vpop.f32.mrb[13].mxu1  ;;  %846 = vmax.xlane.f32.xlu1 %v845_v43  ;;  %849 = vmax.xlane.f32.xlu0 %v848_v45  ;;  %v2697_v47 = vadd.f32 %v2127_v44, %v1860_v15 }
 0x1fc   : > { %v2699_v48 = vadd.f32 %v1860_v15, %v795_v46 }
 0x1fd   : > { %v857_v55 = vsel %vm324_vm1, %v2697_v47, -inf }
 0x1fe   : > { %v2130_v50 = vpop.f32.mrb[14].mxu1  ;;  %v854_v51 = vsel %vm324_vm1, %v2699_v48, -inf }
 0x1ff   : > { %v805_v52 = vpop.f32.mrb[15].mxu1  ;;  %852 = vmax.xlane.f32.xlu1 %v851_v49  ;;  %855 = vmax.xlane.f32.xlu0 %v854_v51  ;;  %v2705_v53 = vadd.f32 %v2130_v50, %v1860_v15 }
 0x200   : > { %v2707_v54 = vadd.f32 %v1860_v15, %v805_v52 }
 0x201   : > { %v863_v61 = vsel %vm324_vm1, %v2705_v53, -inf }
 0x202   : > { %v2133_v56 = vpop.f32.mrb[16].mxu1  ;;  %v860_v57 = vsel %vm324_vm1, %v2707_v54, -inf }
 0x203   : > { %v815_v58 = vpop.f32.mrb[17].mxu1  ;;  %858 = vmax.xlane.f32.xlu1 %v857_v55  ;;  %861 = vmax.xlane.f32.xlu0 %v860_v57  ;;  %v2713_v59 = vadd.f32 %v2133_v56, %v1860_v15 }
 0x204   : > { %v2715_v60 = vadd.f32 %v1860_v15, %v815_v58 }
 0x205   : > { %v869_v63 = vsel %vm324_vm1, %v2713_v59, -inf }
 0x206   : > { %v866_v62 = vsel %vm324_vm1, %v2715_v60, -inf }
 0x207   : > { %864 = vmax.xlane.f32.xlu1 %v863_v61  ;;  %867 = vmax.xlane.f32.xlu0 %v866_v62 }
 0x20b   : > { %870 = vmax.xlane.f32.xlu1 %v869_v63 }
 0x278   : > { %v826_v1 = vpop.xlane.xlu0 %825 }
 0x279   : > { %v872_v2 = vsub.f32 %v2659_v18, %v826_v1 }
 0x27b   : > { %v888_v3 = vmul.f32 1.442695, %v872_v2 }
 0x27c   : > { %v832_v4 = vpop.xlane.xlu1 %831  ;;  %v829_v5 = vpop.xlane.xlu0 %828 }
 0x27d   : > { %2294 = vpow2.f32 %v888_v3  ;;  %v874_v6 = vsub.f32 %v2667_v24, %v832_v4  ;;  %v873_v7 = vsub.f32 %v2661_v19, %v829_v5 }
 0x27f   : > { %v892_v8 = vmul.f32 1.442695, %v874_v6  ;;  %v890_v9 = vmul.f32 1.442695, %v873_v7 }
 0x280   : > { %v835_v10 = vpop.xlane.xlu1 %834  ;;  %v838_v11 = vpop.xlane.xlu0 %837 }
 0x281   : > { %2296 = vpow2.f32 %v892_v8  ;;  %v875_v12 = vsub.f32 %v2665_v23, %v835_v10  ;;  %v876_v13 = vsub.f32 %v2675_v30, %v838_v11 }
 0x282   : > { %2298 = vpow2.f32 %v890_v9 }
 0x283   : > { %v894_v14 = vmul.f32 1.442695, %v875_v12  ;;  %v896_v15 = vmul.f32 1.442695, %v876_v13 }
 0x284   : > { %v841_v16 = vpop.xlane.xlu1 %840  ;;  %v844_v17 = vpop.xlane.xlu0 %843 }
 0x285   : > { %2300 = vpow2.f32 %v894_v14  ;;  %v877_v20 = vsub.f32 %v2673_v29, %v841_v16  ;;  %v878_v21 = vsub.f32 %v2683_v36, %v844_v17 }
 0x286   : > { %2302 = vpow2.f32 %v896_v15 }
 0x287   : > { %v2730_v22 = vpop.eup %2294  ;;  %v898_v25 = vmul.f32 1.442695, %v877_v20  ;;  %v900_v26 = vmul.f32 1.442695, %v878_v21 }
 0x288   : > { %v847_v27 = vpop.xlane.xlu1 %846  ;;  %v850_v28 = vpop.xlane.xlu0 %849  ;;  %v920_v31 = vsel %vm324_vm1, %v2730_v22, 0.0 }
 0x289   : > { %2304 = vpow2.f32 %v898_v25  ;;  %v879_v32 = vsub.f32 %v2681_v35, %v847_v27  ;;  %v880_v33 = vsub.f32 %v2691_v42, %v850_v28  ;;  %921 = vadd.xlane.f32.xlu0 %v920_v31 }
 0x28a   : > { %2306 = vpow2.f32 %v900_v26 }
 0x28b   : > { %v2736_v34 = vpop.eup %2296  ;;  %v902_v37 = vmul.f32 1.442695, %v879_v32  ;;  %v904_v38 = vmul.f32 1.442695, %v880_v33 }
 0x28c   : > { %v2738_v39 = vpop.eup %2298  ;;  %v853_v40 = vpop.xlane.xlu1 %852  ;;  %v926_v44 = vsel %vm324_vm1, %v2736_v34, 0.0 }
 0x28d   : > { %v856_v43 = vpop.xlane.xlu0 %855  ;;  %2308 = vpow2.f32 %v902_v37  ;;  %v881_v45 = vsub.f32 %v2689_v41, %v853_v40  ;;  %927 = vadd.xlane.f32.xlu0 %v926_v44  ;;  %v923_v49 = vsel %vm324_vm1, %v2738_v39, 0.0 }
 0x28e   : > { %v882_v46 = vsub.f32 %v2699_v48, %v856_v43  ;;  %2310 = vpow2.f32 %v904_v38  ;;  %924 = vadd.xlane.f32.xlu1 %v923_v49  ;;  %v1386_v49 = vld [vmem:[%s3269_s7 + $0x80] sm:$0xff] }
 0x28f   : > { %v2746_v50 = vpop.eup %2300  ;;  %v906_v51 = vmul.f32 1.442695, %v881_v45 }
 0x290   : > { %v908_v52 = vmul.f32 1.442695, %v882_v46  ;;  %v2748_v55 = vpop.eup %2302  ;;  %v859_v56 = vpop.xlane.xlu1 %858  ;;  %v929_v58 = vsel %vm324_vm1, %v2746_v50, 0.0 }
 0x291   : > { %v862_v57 = vpop.xlane.xlu0 %861  ;;  %2312 = vpow2.f32 %v906_v51  ;;  %v883_v61 = vsub.f32 %v2697_v47, %v859_v56  ;;  %v932_v63 = vsel %vm324_vm1, %v2748_v55, 0.0  ;;  %v1387_v51 = vld [vmem:[%s3269_s7 + $0x88] sm:$0xff]  ;;  %v1418_v56 = vld [vmem:[%s3269_s7 + $0x180] sm:$0xff] }
 0x292   : > { %v884_v62 = vsub.f32 %v2707_v54, %v862_v57  ;;  %2314 = vpow2.f32 %v908_v52  ;;  %930 = vadd.xlane.f32.xlu1 %v929_v58  ;;  %933 = vadd.xlane.f32.xlu0 %v932_v63  ;;  %v2158_v52 = vpack.c.bf16 %v1387_v51, %v1386_v49  ;;  %v1419_v57 = vld [vmem:[%s3269_s7 + $0x188] sm:$0xff] }
 0x293   : > { %v2756_v1 = vpop.eup %2304  ;;  %v910_v2 = vmul.f32 1.442695, %v883_v61  ;;  %v2815_v58 = vpack.c.bf16 %v1419_v57, %v1418_v56  ;;  %v1423_v49 = vld [vmem:[%s3269_s7 + $0x1a8] sm:$0xff] }
 0x294   : > { %v912_v3 = vmul.f32 1.442695, %v884_v62  ;;  %v2758_v4 = vpop.eup %2306  ;;  %v865_v5 = vpop.xlane.xlu1 %864  ;;  %v935_v7 = vsel %vm324_vm1, %v2756_v1, 0.0  ;;  %2159 = vmatprep.subr.bf16.mxu0 %v2158_v52 }
 0x295   : > { %v868_v6 = vpop.xlane.xlu0 %867  ;;  %2316 = vpow2.f32 %v910_v2  ;;  %v885_v8 = vsub.f32 %v2705_v53, %v865_v5  ;;  %v938_v10 = vsel %vm324_vm1, %v2758_v4, 0.0  ;;  %2222 = vmatprep.subr.bf16.mxu1 %v2815_v58  ;;  %v1370_v2 = vld [vmem:[%s3269_s7] sm:$0xff] }
 0x296   : > { %v886_v9 = vsub.f32 %v2715_v60, %v868_v6  ;;  %2318 = vpow2.f32 %v912_v3  ;;  %936 = vadd.xlane.f32.xlu1 %v935_v7  ;;  %939 = vadd.xlane.f32.xlu0 %v938_v10  ;;  %v1371_v3 = vld [vmem:[%s3269_s7 + $0x8] sm:$0xff]  ;;  %v1388_v6 = vld [vmem:[%s3269_s7 + $0x90] sm:$0xff]  ;;  %v1402_v7 = vld [vmem:[%s3269_s7 + $0x100] sm:$0xff] }
 0x297   : > { %v2766_v11 = vpop.eup %2308  ;;  %v914_v12 = vmul.f32 1.442695, %v885_v8  ;;  %v1403_v8 = vld [vmem:[%s3269_s7 + $0x108] sm:$0xff]  ;;  %v1420_v10 = vld [vmem:[%s3269_s7 + $0x190] sm:$0xff] }
 0x298   : > { %v916_v13 = vmul.f32 1.442695, %v886_v9  ;;  %v2768_v14 = vpop.eup %2310  ;;  %v871_v15 = vpop.xlane.xlu1 %870  ;;  %v941_v16 = vsel %vm324_vm1, %v2766_v11, 0.0  ;;  %v1389_v9 = vld [vmem:[%s3269_s7 + $0x98] sm:$0xff] }
 0x299   : > { %2320 = vpow2.f32 %v914_v12  ;;  %v887_v17 = vsub.f32 %v2713_v59, %v871_v15  ;;  %v944_v20 = vsel %vm324_vm1, %v2768_v14, 0.0  ;;  %v1421_v12 = vld [vmem:[%s3269_s7 + $0x198] sm:$0xff] }
 0x29a   : > { %2322 = vpow2.f32 %v916_v13  ;;  %942 = vadd.xlane.f32.xlu1 %v941_v16  ;;  %945 = vadd.xlane.f32.xlu0 %v944_v20  ;;  %v2160_v16 = vpack.c.bf16 %v1371_v3, %v1370_v2 }
 0x29b   : > { %v2775_v21 = vpop.eup %2312  ;;  %v918_v25 = vmul.f32 1.442695, %v887_v17  ;;  %v2843_v17 = vpack.c.bf16 %v1403_v8, %v1402_v7  ;;  %v1407_v7 = vld [vmem:[%s3269_s7 + $0x128] sm:$0xff]  ;;  %v1393_v8 = vld [vmem:[%s3269_s7 + $0xb8] sm:$0xff] }
 0x29c   : > { %v2777_v26 = vpop.eup %2314  ;;  %v947_v27 = vsel %vm324_vm1, %v2775_v21, 0.0 }
 0x29d   : > { %2324 = vpow2.f32 %v918_v25  ;;  %v950_v28 = vsel %vm324_vm1, %v2777_v26, 0.0  ;;  %v2162_v25 = vpack.c.bf16 %v1389_v9, %v1388_v6  ;;  %v1406_v6 = vld [vmem:[%s3269_s7 + $0x120] sm:$0xff]  ;;  %v1424_v9 = vld [vmem:[%s3269_s7 + $0x1b0] sm:$0xff] }
 0x29e   : > { %948 = vadd.xlane.f32.xlu1 %v947_v27  ;;  %951 = vadd.xlane.f32.xlu0 %v950_v28  ;;  %v1372_v27 = vld [vmem:[%s3269_s7 + $0x10] sm:$0xff]  ;;  %v1373_v28 = vld [vmem:[%s3269_s7 + $0x18] sm:$0xff] }
 0x29f   : > { %v2783_v31 = vpop.eup %2316  ;;  %v2164_v57 = vpack.c.bf16 %v1373_v28, %v1372_v27  ;;  %v1377_v28 = vld [vmem:[%s3269_s7 + $0x38] sm:$0xff] }
 0x2a0   : > { %v2785_v32 = vpop.eup %2318  ;;  %v953_v33 = vsel %vm324_vm1, %v2783_v31, 0.0 }
 0x2a1   : > { %v956_v37 = vsel %vm324_vm1, %v2785_v32, 0.0 }
 0x2a2   : > { %954 = vadd.xlane.f32.xlu1 %v953_v33  ;;  %957 = vadd.xlane.f32.xlu0 %v956_v37  ;;  %v2851_v33 = vpack.c.bf16 %v1421_v12, %v1420_v10  ;;  %v1404_v37 = vld [vmem:[%s3269_s7 + $0x110] sm:$0xff]  ;;  %v1425_v10 = vld [vmem:[%s3269_s7 + $0x1b8] sm:$0xff] }
 0x2a3   : > { %v2791_v38 = vpop.eup %2320 }
 0x2a4   : > { %v2793_v40 = vpop.eup %2322  ;;  %v959_v43 = vsel %vm324_vm1, %v2791_v38, 0.0 }
 0x2a5   : > { %v962_v44 = vsel %vm324_vm1, %v2793_v40, 0.0 }
 0x2a6   : > { %960 = vadd.xlane.f32.xlu1 %v959_v43  ;;  %963 = vadd.xlane.f32.xlu0 %v962_v44  ;;  %v1405_v43 = vld [vmem:[%s3269_s7 + $0x118] sm:$0xff]  ;;  %v1391_v44 = vld [vmem:[%s3269_s7 + $0xa8] sm:$0xff] }
 0x2a7   : > { %v2799_v45 = vpop.eup %2324 }
 0x2a8   : > { %v965_v46 = vsel %vm324_vm1, %v2799_v45, 0.0 }
 0x2aa   : > { %966 = vadd.xlane.f32.xlu1 %v965_v46  ;;  %v1422_v46 = vld [vmem:[%s3269_s7 + $0x1a0] sm:$0xff] }
 0x316   : > { %v922_v61 = vpop.xlane.xlu0 %921 }
 0x317   : > { %2326 = vrcp.f32 %v922_v61  ;;  %v1374_v61 = vld [vmem:[%s3269_s7 + $0x20] sm:$0xff] }
 0x31a   : > { %v928_v63 = vpop.xlane.xlu0 %927 }
 0x31b   : > { %v925_v62 = vpop.xlane.xlu1 %924 }
 0x31c   : > { %2328 = vrcp.f32 %v925_v62  ;;  %v1375_v62 = vld [vmem:[%s3269_s7 + $0x28] sm:$0xff] }
 0x31d   : > { %2330 = vrcp.f32 %v928_v63  ;;  %v2884_v63 = vpack.c.bf16 %v1405_v43, %v1404_v37  ;;  %v1409_v37 = vld [vmem:[%s3269_s7 + $0x138] sm:$0xff]  ;;  %v1394_v43 = vld [vmem:[%s3269_s7 + $0xc0] sm:$0xff] }
 0x31f   : > { %v931_v5 = vpop.xlane.xlu1 %930  ;;  %v934_v20 = vpop.xlane.xlu0 %933 }
 0x320   : > { %2332 = vrcp.f32 %v931_v5  ;;  %v2889_v5 = vpack.c.bf16 %v1423_v49, %v1422_v46 }
 0x321   : > { %v2327_v13 = vpop.eup %2326  ;;  %2334 = vrcp.f32 %v934_v20  ;;  %v2915_v20 = vpack.c.bf16 %v1407_v7, %v1406_v6 }
 0x322   : > { %v984_v15 = vmul.f32 %v2327_v13, %v2730_v22  ;;  %v1390_v22 = vld [vmem:[%s3269_s7 + $0xa0] sm:$0xff] }
 0x323   : > { %v937_v52 = vpop.xlane.xlu1 %936  ;;  %v2166_v3 = vpack.c.bf16 %v1391_v44, %v1390_v22  ;;  %v940_v12 = vpop.xlane.xlu0 %939  ;;  %v1408_v22 = vld [vmem:[%s3269_s7 + $0x130] sm:$0xff]  ;;  %v1395_v44 = vld [vmem:[%s3269_s7 + $0xc8] sm:$0xff] }
 0x324   : > { %1877 = vmatmul.mubr.msk.f32.vlgmr.msra.gmra.mrb[4].mxu0 %vm324_vm1, %v984_v15  ;;  %1893 = vmatmul.mubr.msk.f32.vlgmr.msra.gmra.mrb[18].mxu1 %vm324_vm1, %v984_v15  ;;  %2336 = vrcp.f32 %v937_v52  ;;  %v2168_v15 = vpack.c.bf16 %v1375_v62, %v1374_v61  ;;  %v2941_v52 = vpack.c.bf16 %v1409_v37, %v1408_v22  ;;  %v1378_v61 = vld [vmem:[%s3269_s7 + $0x40] sm:$0xff]  ;;  %v1379_v62 = vld [vmem:[%s3269_s7 + $0x48] sm:$0xff]  ;;  %v1401_v37 = vld [vmem:[%s3269_s7 + $0xf8] sm:$0xff] }
 0x325   : > { %1118 = vmatprep.mubr.f32.mxu0 %v2457_v0  ;;  %1279 = vmatprep.mubr.f32.mxu1 %v2457_v0  ;;  %2338 = vrcp.f32 %v940_v12  ;;  %v2176_v6 = vpack.c.bf16 %v1379_v62, %v1378_v61  ;;  %v1399_v12 = vld [vmem:[%s3269_s7 + $0xe8] sm:$0xff] }
 0x326   : > { %v2329_v51 = vpop.eup %2328  ;;  %2161 = vmatpush3.bf16.msra.mxu0 %v2160_v16  ;;  %2230 = vmatpush3.bf16.msra.mxu1 %v2843_v17  ;;  %v1376_v16 = vld [vmem:[%s3269_s7 + $0x30] sm:$0xff]  ;;  %v1383_v22 = vld [vmem:[%s3269_s7 + $0x68] sm:$0xff] }
 0x327   : > { %v985_v56 = vmul.f32 %v2329_v51, %v2738_v39  ;;  %2163 = vmatprep.subr.bf16.mxu0 %v2162_v25  ;;  %2223 = vmatprep.subr.bf16.mxu1 %v2851_v33  ;;  %v2331_v2 = vpop.eup %2330  ;;  %v1392_v39 = vld [vmem:[%s3269_s7 + $0xb0] sm:$0xff]  ;;  %v943_v46 = vpop.xlane.xlu1 %942  ;;  %v2172_v51 = vpack.c.bf16 %v1377_v28, %v1376_v16  ;;  %v1382_v28 = vld [vmem:[%s3269_s7 + $0x60] sm:$0xff] }
 0x328   : > { %v986_v13 = vmul.f32 %v2331_v2, %v2736_v34  ;;  %v2170_v27 = vpack.c.bf16 %v1393_v8, %v1392_v39  ;;  %v2921_v34 = vpack.c.bf16 %v1425_v10, %v1424_v9  ;;  %v1397_v2 = vld [vmem:[%s3269_s7 + $0xd8] sm:$0xff]  ;;  %2340 = vrcp.f32 %v943_v46  ;;  %v1380_v9 = vld [vmem:[%s3269_s7 + $0x50] sm:$0xff] }
 0x329   : > { %1878 = vmatmul.mubr.msk.f32.gmra.mrb[6].mxu0 %vm324_vm1, %v985_v56  ;;  %1894 = vmatmul.mubr.msk.f32.gmra.mrb[20].mxu1 %vm324_vm1, %v985_v56  ;;  %v1381_v10 = vld [vmem:[%s3269_s7 + $0x58] sm:$0xff]  ;;  %v2184_v46 = vpack.c.bf16 %v1383_v22, %v1382_v28 }
 0x32a   : > { %1124 = vmatprep.mubr.f32.mxu0 %v2457_v0  ;;  %1285 = vmatprep.mubr.f32.mxu1 %v2457_v0  ;;  %v2333_v25 = vpop.eup %2332  ;;  %v2180_v16 = vpack.c.bf16 %v1381_v10, %v1380_v9  ;;  %v1429_v28 = vld [vmem:[%s3269_s7 + $0x1d8] sm:$0xff] }
 0x32b   : > { %2165 = vmatpush3.bf16.msra.mxu0 %v2164_v57  ;;  %2231 = vmatpush3.bf16.msra.mxu1 %v2884_v63  ;;  %v987_v49 = vmul.f32 %v2333_v25, %v2746_v50  ;;  %v2335_v56 = vpop.eup %2334  ;;  %v2174_v57 = vpack.c.bf16 %v1395_v44, %v1394_v43  ;;  %v1396_v50 = vld [vmem:[%s3269_s7 + $0xd0] sm:$0xff] }
 0x32c   : > { %2167 = vmatprep.subr.bf16.mxu0 %v2166_v3  ;;  %2224 = vmatprep.subr.bf16.mxu1 %v2889_v5  ;;  %v946_v3 = vpop.xlane.xlu0 %945  ;;  %v988_v39 = vmul.f32 %v2335_v56, %v2748_v55  ;;  %v2178_v8 = vpack.c.bf16 %v1397_v2, %v1396_v50  ;;  %v1398_v55 = vld [vmem:[%s3269_s7 + $0xe0] sm:$0xff]  ;;  %v1384_v56 = vld [vmem:[%s3269_s7 + $0x70] sm:$0xff] }
 0x32d   : > { %1879 = vmatmul.mubr.msk.f32.gmra.mrb[8].mxu0 %vm324_vm1, %v986_v13  ;;  %1895 = vmatmul.mubr.msk.f32.gmra.mrb[22].mxu1 %vm324_vm1, %v986_v13  ;;  %2342 = vrcp.f32 %v946_v3  ;;  %v949_v13 = vpop.xlane.xlu1 %948 }
 0x32e   : > { %1130 = vmatprep.mubr.f32.mxu0 %v2457_v0  ;;  %1291 = vmatprep.mubr.f32.mxu1 %v2457_v0  ;;  %v2337_v7 = vpop.eup %2336  ;;  %2344 = vrcp.f32 %v949_v13 }
 0x32f   : > { %2169 = vmatpush3.bf16.msra.mxu0 %v2168_v15  ;;  %2232 = vmatpush3.bf16.msra.mxu1 %v2915_v20  ;;  %v989_v15 = vmul.f32 %v2337_v7, %v2756_v1  ;;  %v2339_v25 = vpop.eup %2338  ;;  %v1400_v1 = vld [vmem:[%s3269_s7 + $0xf0] sm:$0xff] }
 0x330   : > { %2171 = vmatprep.subr.bf16.mxu0 %v2170_v27  ;;  %2225 = vmatprep.subr.bf16.mxu1 %v2921_v34  ;;  %v2182_v27 = vpack.c.bf16 %v1399_v12, %v1398_v55  ;;  %v952_v43 = vpop.xlane.xlu0 %951  ;;  %v990_v44 = vmul.f32 %v2339_v25, %v2758_v4 }
 0x331   : > { %1880 = vmatmul.mubr.msk.f32.gmra.mrb[10].mxu0 %vm324_vm1, %v987_v49  ;;  %1896 = vmatmul.mubr.msk.f32.gmra.mrb[24].mxu1 %vm324_vm1, %v987_v49  ;;  %2346 = vrcp.f32 %v952_v43  ;;  %v955_v4 = vpop.xlane.xlu1 %954 }
 0x332   : > { %1136 = vmatprep.mubr.f32.mxu0 %v2457_v0  ;;  %1297 = vmatprep.mubr.f32.mxu1 %v2457_v0  ;;  %v2341_v49 = vpop.eup %2340  ;;  %2348 = vrcp.f32 %v955_v4  ;;  %v1432_v4 = vld [vmem:[%s3269_s7 + $0x1f0] sm:$0xff] }
 0x333   : > { %2173 = vmatpush3.bf16.msra.mxu0 %v2172_v51  ;;  %2233 = vmatpush3.bf16.msra.mxu1 %v2941_v52  ;;  %v2186_v51 = vpack.c.bf16 %v1401_v37, %v1400_v1  ;;  %v991_v61 = vmul.f32 %v2341_v49, %v2766_v11  ;;  %v1412_v1 = vld [vmem:[%s3269_s7 + $0x150] sm:$0xff]  ;;  %v1413_v37 = vld [vmem:[%s3269_s7 + $0x158] sm:$0xff] }
 0x334   : > { %2175 = vmatprep.subr.bf16.mxu0 %v2174_v57  ;;  %v1385_v57 = vld [vmem:[%s3269_s7 + $0x78] sm:$0xff]  ;;  %v958_v2 = vpop.xlane.xlu0 %957  ;;  %v3082_v43 = vpack.c.bf16 %v1413_v37, %v1412_v1 }
 0x335   : > { %1881 = vmatmul.mubr.msk.f32.gmra.mrb[12].mxu0 %vm324_vm1, %v988_v39  ;;  %1897 = vmatmul.mubr.msk.f32.gmra.mrb[26].mxu1 %vm324_vm1, %v988_v39  ;;  %v2188_v62 = vpack.c.bf16 %v1385_v57, %v1384_v56  ;;  %2350 = vrcp.f32 %v958_v2  ;;  %v961_v11 = vpop.xlane.xlu1 %960  ;;  %v1415_v56 = vld [vmem:[%s3269_s7 + $0x168] sm:$0xff]  ;;  %v1417_v2 = vld [vmem:[%s3269_s7 + $0x178] sm:$0xff] }
 0x336   : > { %1142 = vmatprep.mubr.f32.mxu0 %v2457_v0  ;;  %1303 = vmatprep.mubr.f32.mxu1 %v2457_v0  ;;  %2352 = vrcp.f32 %v961_v11 }
 0x337   : > { %2177 = vmatpush3.bf16.msra.mxu0 %v2176_v6  ;;  %v2343_v50 = vpop.eup %2342 }
 0x338   : > { %2179 = vmatprep.subr.bf16.mxu0 %v2178_v8  ;;  %v992_v3 = vmul.f32 %v2343_v50, %v2768_v14  ;;  %v2345_v39 = vpop.eup %2344  ;;  %v964_v14 = vpop.xlane.xlu0 %963  ;;  %v1416_v50 = vld [vmem:[%s3269_s7 + $0x170] sm:$0xff] }
 0x339   : > { %1882 = vmatmul.mubr.msk.f32.gmra.mrb[14].mxu0 %vm324_vm1, %v989_v15  ;;  %1898 = vmatmul.mubr.msk.f32.gmra.mrb[28].mxu1 %vm324_vm1, %v989_v15  ;;  %v993_v6 = vmul.f32 %v2345_v39, %v2775_v21  ;;  %2354 = vrcp.f32 %v964_v14  ;;  %v967_v21 = vpop.xlane.xlu1 %966  ;;  %v1426_v15 = vld [vmem:[%s3269_s7 + $0x1c0] sm:$0xff] }
 0x33a   : > { %1148 = vmatprep.mubr.f32.mxu0 %v2457_v0  ;;  %1309 = vmatprep.mubr.f32.mxu1 %v2457_v0  ;;  %2356 = vrcp.f32 %v967_v21 }
 0x33b   : > { %2181 = vmatpush3.bf16.msra.mxu0 %v2180_v16  ;;  %v2347_v7 = vpop.eup %2346 }
 0x33c   : > { %2183 = vmatprep.subr.bf16.mxu0 %v2182_v27  ;;  %v2349_v8 = vpop.eup %2348  ;;  %v1428_v27 = vld [vmem:[%s3269_s7 + $0x1d0] sm:$0xff] }
 0x33d   : > { %1883 = vmatmul.mubr.msk.f32.gmra.mrb[16].mxu0 %vm324_vm1, %v990_v44  ;;  %1899 = vmatmul.mubr.msk.f32.gmra.mrb[30].mxu1 %vm324_vm1, %v990_v44  ;;  %v995_v9 = vmul.f32 %v2349_v8, %v2783_v31  ;;  %v3074_v22 = vpack.c.bf16 %v1429_v28, %v1428_v27  ;;  %v1430_v44 = vld [vmem:[%s3269_s7 + $0x1e0] sm:$0xff] }
 0x33e   : > { %1154 = vmatprep.mubr.f32.mxu0 %v2457_v0  ;;  %1315 = vmatprep.mubr.f32.mxu1 %v2457_v0 }
 0x33f   : > { %2185 = vmatpush3.bf16.msra.mxu0 %v2184_v46  ;;  %v2351_v10 = vpop.eup %2350  ;;  %v1431_v46 = vld [vmem:[%s3269_s7 + $0x1e8] sm:$0xff] }
 0x340   : > { %2187 = vmatprep.subr.bf16.mxu0 %v2186_v51  ;;  %v2353_v55 = vpop.eup %2352  ;;  %v3092_v49 = vpack.c.bf16 %v1431_v46, %v1430_v44  ;;  %v1414_v51 = vld [vmem:[%s3269_s7 + $0x160] sm:$0xff] }
 0x341   : > { %1884 = vmatmul.mubr.msk.f32.gmra.mrb[18].mxu0 %vm324_vm1, %v991_v61  ;;  %1900 = vmatmul.mubr.msk.f32.gmra.mrb[32].mxu1 %vm324_vm1, %v991_v61  ;;  %v997_v31 = vmul.f32 %v2353_v55, %v2791_v38  ;;  %v3100_v57 = vpack.c.bf16 %v1415_v56, %v1414_v51  ;;  %v1433_v61 = vld [vmem:[%s3269_s7 + $0x1f8] sm:$0xff] }
 0x342   : > { %1160 = vmatprep.mubr.f32.mxu0 %v2457_v0  ;;  %1321 = vmatprep.mubr.f32.mxu1 %v2457_v0 }
 0x343   : > { %2189 = vmatpush3.bf16.msra.mxu0 %v2188_v62  ;;  %v2355_v12 = vpop.eup %2354  ;;  %v3110_v62 = vpack.c.bf16 %v1433_v61, %v1432_v4 }
 0x344   : > { %2191 = vmatprep.subr.bf16.mxu0 %v2815_v58  ;;  %v994_v58 = vmul.f32 %v2347_v7, %v2777_v26  ;;  %v996_v26 = vmul.f32 %v2351_v10, %v2785_v32  ;;  %v998_v32 = vmul.f32 %v2355_v12, %v2793_v40  ;;  %v2357_v13 = vpop.eup %2356  ;;  %v1427_v40 = vld [vmem:[%s3269_s7 + $0x1c8] sm:$0xff] }
 0x345   : > { %1885 = vmatmul.mubr.msk.f32.gmra.mrb[20].mxu0 %vm324_vm1, %v992_v3  ;;  %1901 = vmatmul.mubr.msk.f32.gmra.mrb[34].mxu1 %vm324_vm1, %v992_v3  ;;  %v999_v38 = vmul.f32 %v2357_v13, %v2799_v45  ;;  %v3056_v16 = vpack.c.bf16 %v1427_v40, %v1426_v15  ;;  %v1411_v45 = vld [vmem:[%s3269_s7 + $0x148] sm:$0xff]  ;;  %v3118_v3 = vpack.c.bf16 %v1417_v2, %v1416_v50 }
 0x346   : > { %1166 = vmatprep.mubr.f32.mxu0 %v2457_v0  ;;  %1327 = vmatprep.mubr.f32.mxu1 %v2457_v0 }
 0x347   : > { %2226 = vmatprep.subr.bf16.mxu1 %v3056_v16 }
 0x349   : > { %1886 = vmatmul.mubr.msk.f32.gmra.mrb[22].mxu0 %vm324_vm1, %v993_v6  ;;  %1902 = vmatmul.mubr.msk.f32.gmra.mrb[36].mxu1 %vm324_vm1, %v993_v6 }
 0x34a   : > { %1172 = vmatprep.mubr.f32.mxu0 %v2457_v0  ;;  %1333 = vmatprep.mubr.f32.mxu1 %v2457_v0 }
 0x34d   : > { %1887 = vmatmul.mubr.msk.f32.gmra.mrb[24].mxu0 %vm324_vm1, %v994_v58  ;;  %1903 = vmatmul.mubr.msk.f32.gmra.mrb[38].mxu1 %vm324_vm1, %v994_v58 }
 0x34e   : > { %1178 = vmatprep.mubr.f32.mxu0 %v2457_v0  ;;  %1339 = vmatprep.mubr.f32.mxu1 %v2457_v0 }
 0x351   : > { %1888 = vmatmul.mubr.msk.f32.gmra.mrb[26].mxu0 %vm324_vm1, %v995_v9  ;;  %1904 = vmatmul.mubr.msk.f32.gmra.mrb[40].mxu1 %vm324_vm1, %v995_v9 }
 0x352   : > { %1184 = vmatprep.mubr.f32.mxu0 %v2457_v0  ;;  %1345 = vmatprep.mubr.f32.mxu1 %v2457_v0 }
 0x355   : > { %1889 = vmatmul.mubr.msk.f32.gmra.mrb[28].mxu0 %vm324_vm1, %v996_v26  ;;  %1905 = vmatmul.mubr.msk.f32.gmra.mrb[42].mxu1 %vm324_vm1, %v996_v26 }
 0x356   : > { %1190 = vmatprep.mubr.f32.mxu0 %v2457_v0  ;;  %1351 = vmatprep.mubr.f32.mxu1 %v2457_v0 }
 0x359   : > { %1890 = vmatmul.mubr.msk.f32.gmra.mrb[30].mxu0 %vm324_vm1, %v997_v31  ;;  %1906 = vmatmul.mubr.msk.f32.gmra.mrb[44].mxu1 %vm324_vm1, %v997_v31 }
 0x35a   : > { %1196 = vmatprep.mubr.f32.mxu0 %v2457_v0  ;;  %1357 = vmatprep.mubr.f32.mxu1 %v2457_v0 }
 0x35d   : > { %1891 = vmatmul.mubr.msk.f32.gmra.mrb[32].mxu0 %vm324_vm1, %v998_v32  ;;  %1907 = vmatmul.mubr.msk.f32.gmra.mrb[46].mxu1 %vm324_vm1, %v998_v32 }
 0x35e   : > { %1202 = vmatprep.mubr.f32.mxu0 %v2457_v0  ;;  %1363 = vmatprep.mubr.f32.mxu1 %v2457_v0  ;;  %v1410_v0 = vld [vmem:[%s3269_s7 + $0x140] sm:$0xff] }
 0x35f   : > { %v3064_v25 = vpack.c.bf16 %v1411_v45, %v1410_v0 }
 0x361   : > { %1892 = vmatmul.mubr.msk.f32.gmra.mrb[34].mxu0 %vm324_vm1, %v999_v38  ;;  %1908 = vmatmul.mubr.msk.f32.gmra.mrb[48].mxu1 %vm324_vm1, %v999_v38 }
 0x362   : > { %2234 = vmatpush3.bf16.msra.mxu1 %v3064_v25 }
 0x363   : > { %2227 = vmatprep.subr.bf16.mxu1 %v3074_v22 }
 0x366   : > { %2235 = vmatpush3.bf16.msra.mxu1 %v3082_v43 }
 0x367   : > { %2228 = vmatprep.subr.bf16.mxu1 %v3092_v49 }
 0x36a   : > { %2236 = vmatpush3.bf16.msra.mxu1 %v3100_v57 }
 0x36b   : > { %2229 = vmatprep.subr.bf16.mxu1 %v3110_v62 }
 0x36e   : > { %2237 = vmatpush3.bf16.msra.mxu1 %v3118_v3 }
 0x3f7   : > { %v1114_v39 = vpop.f32.mrb[4].mxu0  ;;  %v3122_v11 = vpop.f32.mrb[18].mxu1 }
 0x3f8   : > { %v1116_v6 = vpop.f32.mrb[5].mxu0  ;;  %v3124_v7 = vpop.f32.mrb[19].mxu1 }
 0x3f9   : > { %1498 = vmatprep.mubr.f32.mxu0 %v1116_v6 }
 0x3fa   : > { %1499 = vmatmul.mubr.f32.vlgmr.msra.gmra.mrb[36].mxu0 %v1114_v39 }
 0x3fb   : > { %2193 = vmatpush3.bf16.msra.mxu0 %v2843_v17 }
 0x3fc   : > { %v1120_v14 = vpop.f32.mrb[6].mxu0  ;;  %v3127_v58 = vpop.f32.mrb[20].mxu1  ;;  %2195 = vmatprep.subr.bf16.mxu0 %v2851_v33 }
 0x3fd   : > { %v1122_v8 = vpop.f32.mrb[7].mxu0  ;;  %v3130_v21 = vpop.f32.mrb[21].mxu1 }
 0x3fe   : > { %1503 = vmatprep.mubr.f32.mxu0 %v1122_v8 }
 0x3ff   : > { %1504 = vmatmul.mubr.f32.gmra.mrb[38].mxu0 %v1120_v14 }
 0x400   : > { %v1126_v9 = vpop.f32.mrb[8].mxu0  ;;  %v3132_v10 = vpop.f32.mrb[22].mxu1  ;;  %2197 = vmatpush3.bf16.msra.mxu0 %v2884_v63 }
 0x401   : > { %v1128_v26 = vpop.f32.mrb[9].mxu0  ;;  %v3135_v55 = vpop.f32.mrb[23].mxu1  ;;  %2199 = vmatprep.subr.bf16.mxu0 %v2889_v5 }
 0x402   : > { %1508 = vmatprep.mubr.f32.mxu0 %v1128_v26 }
 0x403   : > { %1509 = vmatmul.mubr.f32.gmra.mrb[40].mxu0 %v1126_v9 }
 0x404   : > { %v1132_v17 = vpop.f32.mrb[10].mxu0  ;;  %v3138_v31 = vpop.f32.mrb[24].mxu1  ;;  %2201 = vmatpush3.bf16.msra.mxu0 %v2915_v20 }
 0x405   : > { %v1134_v33 = vpop.f32.mrb[11].mxu0  ;;  %v3141_v12 = vpop.f32.mrb[25].mxu1  ;;  %2203 = vmatprep.subr.bf16.mxu0 %v2921_v34 }
 0x406   : > { %1513 = vmatprep.mubr.f32.mxu0 %v1134_v33 }
 0x407   : > { %1514 = vmatmul.mubr.f32.gmra.mrb[42].mxu0 %v1132_v17 }
 0x408   : > { %v1138_v63 = vpop.f32.mrb[12].mxu0  ;;  %v1299_v32 = vpop.f32.mrb[26].mxu1  ;;  %2205 = vmatpush3.bf16.msra.mxu0 %v2941_v52 }
 0x409   : > { %v1140_v13 = vpop.f32.mrb[13].mxu0  ;;  %v1301_v5 = vpop.f32.mrb[27].mxu1  ;;  %2207 = vmatprep.subr.bf16.mxu0 %v3056_v16 }
 0x40a   : > { %1518 = vmatprep.mubr.f32.mxu0 %v1140_v13  ;;  %1663 = vmatprep.mubr.f32.mxu1 %v1301_v5 }
 0x40b   : > { %1519 = vmatmul.mubr.f32.gmra.mrb[44].mxu0 %v1138_v63  ;;  %1664 = vmatmul.mubr.f32.vlgmr.msra.gmra.mrb[50].mxu1 %v1299_v32 }
 0x40c   : > { %v1144_v20 = vpop.f32.mrb[14].mxu0  ;;  %v1305_v38 = vpop.f32.mrb[28].mxu1  ;;  %2209 = vmatpush3.bf16.msra.mxu0 %v3064_v25 }
 0x40d   : > { %v1146_v15 = vpop.f32.mrb[15].mxu0  ;;  %v1307_v34 = vpop.f32.mrb[29].mxu1  ;;  %2211 = vmatprep.subr.bf16.mxu0 %v3074_v22 }
 0x40e   : > { %1523 = vmatprep.mubr.f32.mxu0 %v1146_v15  ;;  %1668 = vmatprep.mubr.f32.mxu1 %v1307_v34 }
 0x40f   : > { %1524 = vmatmul.mubr.f32.gmra.mrb[46].mxu0 %v1144_v20  ;;  %1669 = vmatmul.mubr.f32.gmra.mrb[52].mxu1 %v1305_v38 }
 0x410   : > { %v1150_v52 = vpop.f32.mrb[16].mxu0  ;;  %v1311_v40 = vpop.f32.mrb[30].mxu1  ;;  %2213 = vmatpush3.bf16.msra.mxu0 %v3082_v43 }
 0x411   : > { %v1152_v16 = vpop.f32.mrb[17].mxu0  ;;  %v1313_v0 = vpop.f32.mrb[31].mxu1  ;;  %2215 = vmatprep.subr.bf16.mxu0 %v3092_v49 }
 0x412   : > { %1528 = vmatprep.mubr.f32.mxu0 %v1152_v16  ;;  %1673 = vmatprep.mubr.f32.mxu1 %v1313_v0 }
 0x413   : > { %1529 = vmatmul.mubr.f32.gmra.mrb[48].mxu0 %v1150_v52  ;;  %1674 = vmatmul.mubr.f32.gmra.mrb[54].mxu1 %v1311_v40 }
 0x414   : > { %v1156_v45 = vpop.f32.mrb[18].mxu0  ;;  %v1317_v25 = vpop.f32.mrb[32].mxu1  ;;  %2217 = vmatpush3.bf16.msra.mxu0 %v3100_v57 }
 0x415   : > { %v1158_v27 = vpop.f32.mrb[19].mxu0  ;;  %v1319_v28 = vpop.f32.mrb[33].mxu1  ;;  %2219 = vmatprep.subr.bf16.mxu0 %v3110_v62 }
 0x416   : > { %1533 = vmatprep.mubr.f32.mxu0 %v1158_v27  ;;  %1678 = vmatprep.mubr.f32.mxu1 %v1319_v28 }
 0x417   : > { %1534 = vmatmul.mubr.f32.gmra.mrb[50].mxu0 %v1156_v45  ;;  %1679 = vmatmul.mubr.f32.gmra.mrb[56].mxu1 %v1317_v25 }
 0x418   : > { %v1162_v22 = vpop.f32.mrb[20].mxu0  ;;  %v1323_v1 = vpop.f32.mrb[34].mxu1  ;;  %2221 = vmatpush3.bf16.msra.mxu0 %v3118_v3 }
 0x419   : > { %v1164_v37 = vpop.f32.mrb[21].mxu0  ;;  %v1325_v43 = vpop.f32.mrb[35].mxu1 }
 0x41a   : > { %1538 = vmatprep.mubr.f32.mxu0 %v1164_v37  ;;  %1683 = vmatprep.mubr.f32.mxu1 %v1325_v43 }
 0x41b   : > { %1539 = vmatmul.mubr.f32.gmra.mrb[52].mxu0 %v1162_v22  ;;  %1684 = vmatmul.mubr.f32.gmra.mrb[58].mxu1 %v1323_v1 }
 0x41c   : > { %v1168_v44 = vpop.f32.mrb[22].mxu0  ;;  %v1329_v46 = vpop.f32.mrb[36].mxu1 }
 0x41d   : > { %v1170_v49 = vpop.f32.mrb[23].mxu0  ;;  %v1331_v51 = vpop.f32.mrb[37].mxu1 }
 0x41e   : > { %1543 = vmatprep.mubr.f32.mxu0 %v1170_v49  ;;  %1688 = vmatprep.mubr.f32.mxu1 %v1331_v51 }
 0x41f   : > { %1544 = vmatmul.mubr.f32.gmra.mrb[54].mxu0 %v1168_v44  ;;  %1689 = vmatmul.mubr.f32.gmra.mrb[60].mxu1 %v1329_v46 }
 0x420   : > { %v1174_v56 = vpop.f32.mrb[24].mxu0  ;;  %v1335_v57 = vpop.f32.mrb[38].mxu1 }
 0x421   : > { %v1176_v4 = vpop.f32.mrb[25].mxu0  ;;  %v1337_v61 = vpop.f32.mrb[39].mxu1 }
 0x422   : > { %1548 = vmatprep.mubr.f32.mxu0 %v1176_v4  ;;  %1693 = vmatprep.mubr.f32.mxu1 %v1337_v61 }
 0x423   : > { %1549 = vmatmul.mubr.f32.gmra.mrb[56].mxu0 %v1174_v56  ;;  %1694 = vmatmul.mubr.f32.gmra.mrb[62].mxu1 %v1335_v57 }
 0x424   : > { %v1180_v62 = vpop.f32.mrb[26].mxu0  ;;  %v1341_v50 = vpop.f32.mrb[40].mxu1 }
 0x425   : > { %v1182_v2 = vpop.f32.mrb[27].mxu0  ;;  %v1343_v3 = vpop.f32.mrb[41].mxu1 }
 0x426   : > { %1553 = vmatprep.mubr.f32.mxu0 %v1182_v2  ;;  %1698 = vmatprep.mubr.f32.mxu1 %v1343_v3 }
 0x427   : > { %1554 = vmatmul.mubr.f32.gmra.mrb[58].mxu0 %v1180_v62  ;;  %1699 = vmatmul.mubr.f32.gmra.mrb[64].mxu1 %v1341_v50 }
 0x428   : > { %v1186_v39 = vpop.f32.mrb[28].mxu0  ;;  %v1347_v6 = vpop.f32.mrb[42].mxu1 }
 0x429   : > { %v1188_v14 = vpop.f32.mrb[29].mxu0  ;;  %v1349_v8 = vpop.f32.mrb[43].mxu1 }
 0x42a   : > { %1558 = vmatprep.mubr.f32.mxu0 %v1188_v14  ;;  %1703 = vmatprep.mubr.f32.mxu1 %v1349_v8 }
 0x42b   : > { %1559 = vmatmul.mubr.f32.gmra.mrb[60].mxu0 %v1186_v39  ;;  %1704 = vmatmul.mubr.f32.gmra.mrb[66].mxu1 %v1347_v6 }
 0x42c   : > { %v1192_v9 = vpop.f32.mrb[30].mxu0  ;;  %v1353_v26 = vpop.f32.mrb[44].mxu1 }
 0x42d   : > { %v1194_v17 = vpop.f32.mrb[31].mxu0  ;;  %v1355_v33 = vpop.f32.mrb[45].mxu1 }
 0x42e   : > { %1563 = vmatprep.mubr.f32.mxu0 %v1194_v17  ;;  %1708 = vmatprep.mubr.f32.mxu1 %v1355_v33 }
 0x42f   : > { %1564 = vmatmul.mubr.f32.gmra.mrb[62].mxu0 %v1192_v9  ;;  %1709 = vmatmul.mubr.f32.gmra.mrb[68].mxu1 %v1353_v26 }
 0x430   : > { %v1198_v63 = vpop.f32.mrb[32].mxu0  ;;  %v1359_v32 = vpop.f32.mrb[46].mxu1 }
 0x431   : > { %v1200_v13 = vpop.f32.mrb[33].mxu0  ;;  %v1361_v5 = vpop.f32.mrb[47].mxu1 }
 0x432   : > { %1568 = vmatprep.mubr.f32.mxu0 %v1200_v13  ;;  %1713 = vmatprep.mubr.f32.mxu1 %v1361_v5 }
 0x433   : > { %1569 = vmatmul.mubr.f32.gmra.mrb[64].mxu0 %v1198_v63  ;;  %1714 = vmatmul.mubr.f32.gmra.mrb[70].mxu1 %v1359_v32 }
 0x434   : > { %v1204_v20 = vpop.f32.mrb[34].mxu0  ;;  %v1365_v38 = vpop.f32.mrb[48].mxu1 }
 0x435   : > { %v1206_v15 = vpop.f32.mrb[35].mxu0  ;;  %v1367_v34 = vpop.f32.mrb[49].mxu1 }
 0x436   : > { %1573 = vmatprep.mubr.f32.mxu0 %v1206_v15  ;;  %1718 = vmatprep.mubr.f32.mxu1 %v1367_v34 }
 0x437   : > { %1574 = vmatmul.mubr.f32.gmra.mrb[66].mxu0 %v1204_v20  ;;  %1719 = vmatmul.mubr.f32.gmra.mrb[72].mxu1 %v1365_v38 }
 0x438   : > { %1643 = vmatprep.mubr.f32.mxu0 %v3124_v7 }
 0x43b   : > { %1644 = vmatmul.mubr.f32.vlgmr.msra.gmra.mrb[68].mxu0 %v3122_v11 }
 0x43c   : > { %1648 = vmatprep.mubr.f32.mxu0 %v3130_v21 }
 0x43f   : > { %1649 = vmatmul.mubr.f32.gmra.mrb[70].mxu0 %v3127_v58 }
 0x440   : > { %1653 = vmatprep.mubr.f32.mxu0 %v3135_v55 }
 0x443   : > { %1654 = vmatmul.mubr.f32.gmra.mrb[72].mxu0 %v3132_v10 }
 0x444   : > { %1658 = vmatprep.mubr.f32.mxu0 %v3141_v12 }
 0x447   : > { %1659 = vmatmul.mubr.f32.gmra.mrb[74].mxu0 %v3138_v31 }
 0x4cd   : > { %v1969_v52 = vpop.f32.mrb[36].mxu0 }
 0x4ce   : > { %v1970_v40 = vpop.f32.mrb[37].mxu0 }
 0x4cf   : > { %v3161_v16 = vadd.f32 %v1970_v40, %v1969_v52 }
 0x4d2   : > { %v1972_v7 = vpop.f32.mrb[38].mxu0 }
 0x4d3   : > { %v1973_v11 = vpop.f32.mrb[39].mxu0 }
 0x4d4   : > { %v3163_v0 = vadd.f32 %v1973_v11, %v1972_v7 }
 0x4d6   : > { %v1975_v21 = vpop.f32.mrb[40].mxu0 }
 0x4d7   : > { %v1976_v58 = vpop.f32.mrb[41].mxu0 }
 0x4d8   : > { %v3165_v45 = vadd.f32 %v1976_v58, %v1975_v21 }
 0x4da   : > { %v1978_v55 = vpop.f32.mrb[42].mxu0 }
 0x4db   : > { %v1979_v25 = vpop.f32.mrb[43].mxu0 }
 0x4dc   : > { %v3167_v10 = vadd.f32 %v1979_v25, %v1978_v55 }
 0x4de   : > { %v1981_v12 = vpop.f32.mrb[44].mxu0  ;;  %v2061_v31 = vpop.f32.mrb[50].mxu1 }
 0x4df   : > { %v1982_v27 = vpop.f32.mrb[45].mxu0  ;;  %v2062_v28 = vpop.f32.mrb[51].mxu1 }
 0x4e0   : > { %v1983_v22 = vadd.f32 %v1982_v27, %v1981_v12  ;;  %v2063_v1 = vadd.f32 %v2062_v28, %v2061_v31 }
 0x4e2   : > { %v1666_v37 = vadd.f32 %v2063_v1, %v1983_v22  ;;  %v1984_v43 = vpop.f32.mrb[46].mxu0  ;;  %v2064_v44 = vpop.f32.mrb[52].mxu1 }
 0x4e3   : > { %v1985_v46 = vpop.f32.mrb[47].mxu0  ;;  %v2065_v49 = vpop.f32.mrb[53].mxu1 }
 0x4e4   : > { %v1728_v51 = vadd.f32 %v1666_v37, %v2675_v30  ;;  %v1986_v56 = vadd.f32 %v1985_v46, %v1984_v43  ;;  %v2066_v57 = vadd.f32 %v2065_v49, %v2064_v44 }
 0x4e6   : > { %1744 = vst [vmem:[%s3173_s12 + $0x20] sm:$0xff] %v1728_v51  ;;  %v1671_v4 = vadd.f32 %v2066_v57, %v1986_v56  ;;  %v1987_v61 = vpop.f32.mrb[48].mxu0  ;;  %v2067_v62 = vpop.f32.mrb[54].mxu1 }
 0x4e7   : > { %v1988_v50 = vpop.f32.mrb[49].mxu0  ;;  %v2068_v2 = vpop.f32.mrb[55].mxu1 }
 0x4e8   : > { %v1729_v3 = vadd.f32 %v1671_v4, %v2673_v29  ;;  %v1989_v39 = vadd.f32 %v1988_v50, %v1987_v61  ;;  %v2069_v6 = vadd.f32 %v2068_v2, %v2067_v62 }
 0x4ea   : > { %1745 = vst [vmem:[%s3173_s12 + $0x28] sm:$0xff] %v1729_v3  ;;  %v1676_v14 = vadd.f32 %v2069_v6, %v1989_v39  ;;  %v1990_v30 = vpop.f32.mrb[50].mxu0  ;;  %v2070_v8 = vpop.f32.mrb[56].mxu1 }
 0x4eb   : > { %v1991_v9 = vpop.f32.mrb[51].mxu0  ;;  %v2071_v26 = vpop.f32.mrb[57].mxu1 }
 0x4ec   : > { %v1730_v17 = vadd.f32 %v1676_v14, %v2683_v36  ;;  %v1992_v33 = vadd.f32 %v1991_v9, %v1990_v30  ;;  %v2072_v63 = vadd.f32 %v2071_v26, %v2070_v8 }
 0x4ee   : > { %1746 = vst [vmem:[%s3173_s12 + $0x30] sm:$0xff] %v1730_v17  ;;  %v1681_v32 = vadd.f32 %v2072_v63, %v1992_v33  ;;  %v1993_v13 = vpop.f32.mrb[52].mxu0  ;;  %v2073_v5 = vpop.f32.mrb[58].mxu1 }
 0x4ef   : > { %v1994_v20 = vpop.f32.mrb[53].mxu0  ;;  %v2074_v29 = vpop.f32.mrb[59].mxu1 }
 0x4f0   : > { %v1731_v38 = vadd.f32 %v1681_v32, %v2681_v35  ;;  %v1995_v15 = vadd.f32 %v1994_v20, %v1993_v13  ;;  %v2075_v34 = vadd.f32 %v2074_v29, %v2073_v5 }
 0x4f2   : > { %1747 = vst [vmem:[%s3173_s12 + $0x38] sm:$0xff] %v1731_v38  ;;  %v1686_v52 = vadd.f32 %v2075_v34, %v1995_v15  ;;  %v1996_v40 = vpop.f32.mrb[54].mxu0  ;;  %v2076_v7 = vpop.f32.mrb[60].mxu1 }
 0x4f3   : > { %v1997_v11 = vpop.f32.mrb[55].mxu0  ;;  %v2077_v36 = vpop.f32.mrb[61].mxu1 }
 0x4f4   : > { %v1732_v21 = vadd.f32 %v1686_v52, %v2691_v42  ;;  %v1998_v58 = vadd.f32 %v1997_v11, %v1996_v40  ;;  %v2078_v55 = vadd.f32 %v2077_v36, %v2076_v7 }
 0x4f6   : > { %1748 = vst [vmem:[%s3173_s12 + $0x40] sm:$0xff] %v1732_v21  ;;  %v1691_v25 = vadd.f32 %v2078_v55, %v1998_v58  ;;  %v1999_v12 = vpop.f32.mrb[56].mxu0  ;;  %v2079_v31 = vpop.f32.mrb[62].mxu1 }
 0x4f7   : > { %v2000_v27 = vpop.f32.mrb[57].mxu0  ;;  %v2080_v35 = vpop.f32.mrb[63].mxu1 }
 0x4f8   : > { %v1733_v28 = vadd.f32 %v1691_v25, %v2689_v41  ;;  %v2001_v22 = vadd.f32 %v2000_v27, %v1999_v12  ;;  %v2081_v1 = vadd.f32 %v2080_v35, %v2079_v31 }
 0x4fa   : > { %1749 = vst [vmem:[%s3173_s12 + $0x48] sm:$0xff] %v1733_v28  ;;  %v1696_v37 = vadd.f32 %v2081_v1, %v2001_v22  ;;  %v2002_v43 = vpop.f32.mrb[58].mxu0  ;;  %v2082_v44 = vpop.f32.mrb[64].mxu1 }
 0x4fb   : > { %v2003_v46 = vpop.f32.mrb[59].mxu0  ;;  %v2083_v42 = vpop.f32.mrb[65].mxu1 }
 0x4fc   : > { %v1734_v49 = vadd.f32 %v1696_v37, %v2699_v48  ;;  %v2004_v51 = vadd.f32 %v2003_v46, %v2002_v43  ;;  %v2084_v56 = vadd.f32 %v2083_v42, %v2082_v44 }
 0x4fe   : > { %1750 = vst [vmem:[%s3173_s12 + $0x50] sm:$0xff] %v1734_v49  ;;  %v1701_v57 = vadd.f32 %v2084_v56, %v2004_v51  ;;  %v2005_v4 = vpop.f32.mrb[60].mxu0  ;;  %v2085_v61 = vpop.f32.mrb[66].mxu1 }
 0x4ff   : > { %v2006_v62 = vpop.f32.mrb[61].mxu0  ;;  %v2086_v41 = vpop.f32.mrb[67].mxu1 }
 0x500   : > { %v1735_v50 = vadd.f32 %v1701_v57, %v2697_v47  ;;  %v2007_v2 = vadd.f32 %v2006_v62, %v2005_v4  ;;  %v2087_v3 = vadd.f32 %v2086_v41, %v2085_v61 }
 0x502   : > { %1751 = vst [vmem:[%s3173_s12 + $0x58] sm:$0xff] %v1735_v50  ;;  %v1706_v39 = vadd.f32 %v2087_v3, %v2007_v2  ;;  %v2008_v6 = vpop.f32.mrb[62].mxu0  ;;  %v2088_v14 = vpop.f32.mrb[68].mxu1 }
 0x503   : > { %v2009_v30 = vpop.f32.mrb[63].mxu0  ;;  %v2089_v48 = vpop.f32.mrb[69].mxu1 }
 0x504   : > { %v1736_v8 = vadd.f32 %v1706_v39, %v2707_v54  ;;  %v2010_v9 = vadd.f32 %v2009_v30, %v2008_v6  ;;  %v2090_v26 = vadd.f32 %v2089_v48, %v2088_v14 }
 0x506   : > { %1752 = vst [vmem:[%s3173_s12 + $0x60] sm:$0xff] %v1736_v8  ;;  %v1711_v17 = vadd.f32 %v2090_v26, %v2010_v9  ;;  %v2011_v33 = vpop.f32.mrb[64].mxu0  ;;  %v2091_v63 = vpop.f32.mrb[70].mxu1 }
 0x507   : > { %v2012_v32 = vpop.f32.mrb[65].mxu0  ;;  %v2092_v47 = vpop.f32.mrb[71].mxu1 }
 0x508   : > { %v1737_v13 = vadd.f32 %v1711_v17, %v2705_v53  ;;  %v2013_v5 = vadd.f32 %v2012_v32, %v2011_v33  ;;  %v2093_v20 = vadd.f32 %v2092_v47, %v2091_v63 }
 0x50a   : > { %1753 = vst [vmem:[%s3173_s12 + $0x68] sm:$0xff] %v1737_v13  ;;  %v1716_v29 = vadd.f32 %v2093_v20, %v2013_v5  ;;  %v2014_v38 = vpop.f32.mrb[66].mxu0  ;;  %v2094_v15 = vpop.f32.mrb[72].mxu1 }
 0x50b   : > { %v2015_v34 = vpop.f32.mrb[67].mxu0  ;;  %v2095_v54 = vpop.f32.mrb[73].mxu1 }
 0x50c   : > { %v1738_v52 = vadd.f32 %v1716_v29, %v2715_v60  ;;  %v2016_v40 = vadd.f32 %v2015_v34, %v2014_v38  ;;  %v2096_v7 = vadd.f32 %v2095_v54, %v2094_v15 }
 0x50e   : > { %1754 = vst [vmem:[%s3173_s12 + $0x70] sm:$0xff] %v1738_v52  ;;  %v1721_v11 = vadd.f32 %v2096_v7, %v2016_v40  ;;  %v2049_v36 = vpop.f32.mrb[68].mxu0 }
 0x50f   : > { %v2050_v21 = vpop.f32.mrb[69].mxu0 }
 0x510   : > { %v1739_v53 = vadd.f32 %v1721_v11, %v2713_v59  ;;  %v2051_v58 = vadd.f32 %v2050_v21, %v2049_v36 }
 0x512   : > { %1755 = vst [vmem:[%s3173_s12 + $0x78] sm:$0xff] %v1739_v53  ;;  %v1646_v55 = vadd.f32 %v2051_v58, %v3161_v16  ;;  %v2052_v25 = vpop.f32.mrb[70].mxu0 }
 0x513   : > { %v2053_v12 = vpop.f32.mrb[71].mxu0 }
 0x514   : > { %v1724_v31 = vadd.f32 %v1646_v55, %v2659_v18  ;;  %v2054_v60 = vadd.f32 %v2053_v12, %v2052_v25 }
 0x516   : > { %1740 = vst [vmem:[%s3173_s12] sm:$0xff] %v1724_v31  ;;  %v1651_v27 = vadd.f32 %v2054_v60, %v3163_v0  ;;  %v2055_v35 = vpop.f32.mrb[72].mxu0 }
 0x517   : > { %v2056_v28 = vpop.f32.mrb[73].mxu0 }
 0x518   : > { %v1725_v59 = vadd.f32 %v1651_v27, %v2661_v19  ;;  %v2057_v22 = vadd.f32 %v2056_v28, %v2055_v35 }
 0x51a   : > { %1741 = vst [vmem:[%s3173_s12 + $0x8] sm:$0xff] %v1725_v59  ;;  %v1656_v16 = vadd.f32 %v2057_v22, %v3165_v45  ;;  %v2058_v1 = vpop.f32.mrb[74].mxu0 }
 0x51b   : > { %v2059_v37 = vpop.f32.mrb[75].mxu0 }
 0x51c   : > { %v1726_v18 = vadd.f32 %v1656_v16, %v2667_v24  ;;  %v2060_v43 = vadd.f32 %v2059_v37, %v2058_v1 }
 0x51e   : > { %1742 = vst [vmem:[%s3173_s12 + $0x10] sm:$0xff] %v1726_v18  ;;  %v1661_v0 = vadd.f32 %v2060_v43, %v3167_v10 }
 0x520   : > { %v1727_v19 = vadd.f32 %v1661_v0, %v2665_v23 }
 0x522   : > { %1743 = vst [vmem:[%s3173_s12 + $0x18] sm:$0xff] %v1727_v19 }
 0x523   : > { %2399 = shalt.err (!%p2396_p7)
}
 0x524   : > { %s2400_s25 = scalar_lea.hbm %s3213_s20, 2048  ;;  %s2404_s12 = scalar_lea.hbm %s3270_s8, 8192 }
 0x525   : > { %p2401_p8 = scmp.ne.s32.totalorder %s3213_s20, %s2400_s25  ;;  %p2405_p1 = scmp.lt.u32.totalorder %s3213_s20, %s3270_s8 }
 0x526   : > { %p2406_p0 = scmp.lt.u32.totalorder %s2404_s12, %s2400_s25  ;;  %p2408_p6 = scmp.lt.u32.totalorder %s2400_s25, %s3213_s20 }
 0x527   : > { %p2402_p11 = pnand %p2401_p8, %p3281_p9 }
 0x528   : > { %p2407_p5 = por %p2406_p0, %p2405_p1 }
 0x529   : > { %p2403_p13 = pneg %p2402_p11 }
 0x52a   : > { %p2409_p10 = por %p2408_p6, %p2407_p5 }
 0x52c   : > { %p2410_p12 = pnand %p2409_p10, %p2403_p13 }
 0x52e   : > { %2413 = shalt.err (!%p2410_p12)
}
 0x52f   : > { %s2460_s22 = smov 128   ;;  %s2461_s9 = smov 8  }
 0x530   : > { %2242 = dma.vmem_to_hbm [thread:$0]  (%p3281_p9), %s3215_s18, 2048, %s3213_s20, %s3221_s19, %s2460_s22, %s2460_s22, %s2461_s9  }
 0x531 PF: > { %p2254_p2 = scmp.ge.s32.totalorder %s2452_s30, 2  ;;  %s1785_s17 = sand.u32 1, %s2440_s27  }
 0x532   : > { %p3282_p3 = scmp.ne.s32.totalorder %s3275_s16, 0  ;;  %s1786_s23 = scalar_lea.sflag [#allocation4], %s1785_s17 }
 0x534   : > { %p2249_p4 = pnand %p2254_p2, %p3282_p3 }
 0x536   : > { %2435 = dma.done.wait (!%p2249_p4), %s1786_s23, 2048  }
 0x537   : > { %2437 = vsyncadd (!%p2249_p4), %s1786_s23, 4294965248  ;;  %p19_p7 = scmp.ge.s32.totalorder %s2532_s11, 6   ;;  %s3283_s27 = smov %s2444_s28 }
 0x538   : > { %s3284_s28 = smov %s2448_s29  ;;  %s3285_s29 = smov %s2543_s14 }
 0x539   : > { %s3286_s30 = smov %s2532_s11  ;;  %21 = sbr.rel (!%p19_p7) target bundleno = 4 (0x4), region = 92 }
 0x540   :  { %1791 = vsyncpa [#allocation3], 1 }
 0x541   :  { %1793 = vsyncpa [#allocation3 + $0x1], 1 }
 0x542   :  { %1794 = vsyncpa [#allocation4], 1 }
 0x543   :  { %1796 = vsyncpa [#allocation4 + $0x1], 1 }

</bundles_post_ra>
